<compile_context>
chip_gen: v6e
topology: v6e:2x2x1
jax: 0.10.0
libtpu: 0.0.40
codegen_flags: <defaults>
</compile_context>

<pallas_src>
import functools

import jax
import jax.numpy as jnp
import numpy as np
from jax import lax
from jax.experimental import pallas as pl
from jax.experimental.pallas import tpu as pltpu


def _mha_kernel(x_ref, wqkv_ref, bqkv_ref, wfc_ref, bfc_ref, o_ref,
                qkv_ref, attn_ref, *, num_heads, head_dim, seq_len,
                batch_block, exp_dtype):
    C = num_heads * head_dim
    bb = batch_block
    n_pad = x_ref.shape[1]
    m = bb * n_pad

    # qkv projection over all bb batch elements at once: bf16 operands, f32
    # accumulation.  The 1/sqrt(D) scale is already folded into the q columns
    # of wqkv/bqkv by the wrapper.  Result is parked in a bf16 VMEM scratch so
    # the large f32 temporary dies immediately (bounded live range).
    x = x_ref[...].reshape(m, C)                                   # bf16
    qkv = jnp.dot(x, wqkv_ref[...], preferred_element_type=jnp.float32)
    qkv = (qkv + bqkv_ref[0]).astype(jnp.bfloat16)                 # (m, 3C)
    qkv_ref[...] = qkv.reshape(bb, n_pad, 3 * C)

    # Additive mask row for padded key positions (hoisted out of all loops).
    if seq_len < n_pad:
        col = lax.broadcasted_iota(jnp.int32, (1, n_pad), 1)
        mask_bias = jnp.where(col < seq_len, 0.0, -1e30).astype(jnp.float32)
    else:
        mask_bias = None

    # Column layout of qkv is [s * C + h * head_dim + d] (s in {q=0,k=1,v=2}),
    # matching PyTorch's reshape(B, N, 3, H, D).permute(2, 0, 3, 1, 4).
    pair = 2 if num_heads % 2 == 0 else 1
    slab_w = pair * head_dim

    @pl.loop(0, bb)
    def _(b):
        for hp in range(num_heads // pair):
            lo = hp * slab_w
            # Lane-dense (128-wide for head_dim=64) loads per head pair; all
            # lane offsets are static, the batch index is dynamic (leading dim).
            q2 = qkv_ref[b, :, lo:lo + slab_w]                     # (n_pad, slab)
            k2 = qkv_ref[b, :, C + lo:C + lo + slab_w]
            v2 = qkv_ref[b, :, 2 * C + lo:2 * C + lo + slab_w]
            outs = []
            for j in range(pair):
                d0 = j * head_dim
                qh = q2[:, d0:d0 + head_dim]
                kh = k2[:, d0:d0 + head_dim]
                vh = v2[:, d0:d0 + head_dim]

                # scores = q @ k^T without materializing a transpose: contract
                # the shared last dim of both operands (no per-head vxpose).
                s = lax.dot_general(qh, kh, (((1,), (1,)), ((), ())),
                                    preferred_element_type=jnp.float32)
                if mask_bias is not None:
                    s = s + mask_bias                              # broadcast add

                # Stable softmax: f32 max/sum, exp in exp_dtype (bf16 on
                # v6e/v7x EUP, f32 on v5e); EUP reciprocal instead of divide,
                # applied to the (N, D) PV output instead of (N, N) probs.
                s = s - jnp.max(s, axis=-1, keepdims=True)
                p = jnp.exp(s.astype(exp_dtype))
                denom = jnp.sum(p.astype(jnp.float32), axis=-1, keepdims=True)
                inv = pl.reciprocal(denom, approx=True)
                pv = jnp.dot(p.astype(jnp.bfloat16), vh,
                             preferred_element_type=jnp.float32)
                outs.append((pv * inv).astype(jnp.bfloat16))

            # One lane-dense store per head pair into the (N, C) accumulator.
            slab = outs[0] if pair == 1 else jnp.concatenate(outs, axis=-1)
            attn_ref[b, :, lo:lo + slab_w] = slab

    # Output projection on the flattened (bb*n_pad, C) attention output.
    # (attn_ref needs no zero-init: every column slab is written above.)
    y = jnp.dot(attn_ref[...].reshape(m, C), wfc_ref[...],
                preferred_element_type=jnp.float32) + bfc_ref[0]
    o_ref[...] = y.reshape(bb, n_pad, C).astype(o_ref.dtype)


def _vmem_estimate(bb, n_pad, c, out_itemsize):
    """Rough per-grid-step VMEM footprint in bytes (weights + blocks + scratch)."""
    m = bb * n_pad
    weights = 2 * (c * 3 * c + c * c) + 4 * (4 * c)            # bf16 W, f32 b
    io = 2 * (m * c * 2) + 2 * (m * c * out_itemsize)          # 2x-buffered x/out
    scratch = m * 3 * c * 2 + m * c * 2                        # qkv + attn (bf16)
    temps = m * 3 * c * 4 + 4 * (n_pad * n_pad * 4)            # f32 qkv val + scores
    return weights + io + scratch + temps


def mha_forward(x, wqkv, bqkv, wfc, bfc, *, num_heads):
    """x: (B, N, C); wqkv: (C, 3C); bqkv: (1, 3C); wfc: (C, C); bfc: (1, C)."""
    B, N, C = x.shape
    assert C % num_heads == 0
    head_dim = C // num_heads
    scale = head_dim ** (-0.5)

    # Fold the softmax scale into the q-projection columns (trace-time, free).
    q_scale = jnp.concatenate([jnp.full((C,), scale, dtype=wqkv.dtype),
                               jnp.ones((2 * C,), dtype=wqkv.dtype)])
    wqkv = wqkv * q_scale[None, :]
    bqkv = bqkv * q_scale[None, :]

    # bf16 MXU operands; biases stay f32 (added to f32 accumulators).
    x_bf = x.astype(jnp.bfloat16)
    wqkv_bf = wqkv.astype(jnp.bfloat16)
    wfc_bf = wfc.astype(jnp.bfloat16)
    bqkv_f32 = bqkv.astype(jnp.float32)
    bfc_f32 = bfc.astype(jnp.float32)

    # Pad the sequence to a bf16-sublane-friendly multiple of 16; padded key
    # positions are masked in-kernel, padded query rows sliced off after.
    N_pad = ((N + 15) // 16) * 16
    if N_pad != N:
        x_bf = jnp.pad(x_bf, ((0, 0), (0, N_pad - N), (0, 0)))

    # bf16 exp only on chips with a bf16-capable EUP (v6e / v7x); f32 elsewhere.
    try:
        kind = jax.devices()[0].device_kind.lower()
    except Exception:
        kind = ""
    use_bf16_exp = ("v6" in kind) or ("v7" in kind) or ("7x" in kind)
    exp_dtype = jnp.bfloat16 if use_bf16_exp else jnp.float32

    # Multi-batch blocking: largest Bb in {4,2,1} dividing B whose footprint
    # fits a conservative budget (also safe for v7x's 64 MiB physical VMEM).
    out_itemsize = jnp.dtype(x.dtype).itemsize
    bb = 1
    for cand in (4, 2, 1):
        if B % cand == 0 and _vmem_estimate(cand, N_pad, C, out_itemsize) <= (36 << 20):
            bb = cand
            break
    est = _vmem_estimate(bb, N_pad, C, out_itemsize)
    vmem_limit = int(min(max(int(est * 1.5), 32 << 20), 56 << 20))

    kernel = functools.partial(_mha_kernel, num_heads=num_heads,
                               head_dim=head_dim, seq_len=N,
                               batch_block=bb, exp_dtype=exp_dtype)

    def build(weight_pipeline_mode):
        def wspec(shape):
            idx = lambda g, _n=len(shape): (0,) * _n    # constant -> resident
            if weight_pipeline_mode is None:
                return pl.BlockSpec(shape, idx)
            return pl.BlockSpec(shape, idx, pipeline_mode=weight_pipeline_mode)

        grid_spec = pltpu.PrefetchScalarGridSpec(
            num_scalar_prefetch=0,
            grid=(B // bb,),
            in_specs=[
                pl.BlockSpec((bb, N_pad, C), lambda g: (g, 0, 0)),
                wspec((C, 3 * C)),
                wspec((1, 3 * C)),
                wspec((C, C)),
                wspec((1, C)),
            ],
            out_specs=pl.BlockSpec((bb, N_pad, C), lambda g: (g, 0, 0)),
            scratch_shapes=[
                pltpu.VMEM((bb, N_pad, 3 * C), jnp.bfloat16),   # qkv slab
                pltpu.VMEM((bb, N_pad, C), jnp.bfloat16),       # attn output slab
            ],
        )
        return pl.pallas_call(
            kernel,
            out_shape=jax.ShapeDtypeStruct((B, N_pad, C), x.dtype),
            grid_spec=grid_spec,
            compiler_params=pltpu.CompilerParams(
                dimension_semantics=("parallel",),
                vmem_limit_bytes=vmem_limit),
        )

    args = (x_bf, wqkv_bf, bqkv_f32, wfc_bf, bfc_f32)
    try:
        # Single-buffer the weights/biases: constant index map, DMA'd once.
        out = build(pl.Buffered(buffer_count=1))(*args)
    except Exception:
        # Fallback for jax versions without BlockSpec.pipeline_mode support.
        out = build(None)(*args)

    return out[:, :N, :] if N_pad != N else out


def mha_reference(x, wqkv, bqkv, wfc, bfc, *, num_heads):
    B, N, C = x.shape
    head_dim = C // num_heads
    scale = head_dim ** (-0.5)
    qkv = x @ wqkv + bqkv[0]                                   # (B, N, 3C)
    qkv = qkv.reshape(B, N, 3, num_heads, head_dim).transpose(2, 0, 3, 1, 4)
    q, k, v = qkv[0], qkv[1], qkv[2]                           # (B, H, N, D)
    attn = jnp.einsum('bhnd,bhmd->bhnm', q, k) * scale
    attn = jax.nn.softmax(attn, axis=-1)
    out = jnp.einsum('bhnm,bhmd->bhnd', attn, v)
    out = out.transpose(0, 2, 1, 3).reshape(B, N, C)
    return out @ wfc + bfc[0]


if __name__ == "__main__":
    B, N, C = 2, 8, 32
    num_heads = 4

    key = jax.random.PRNGKey(0)
    kx, k1, k2, k3, k4 = jax.random.split(key, 5)

    x = jax.random.normal(kx, (B, N, C), dtype=jnp.float32)
    # Deterministic synthetic parameters (nn.Linear-like scale).
    wqkv = jax.random.normal(k1, (C, 3 * C), dtype=jnp.float32) * (C ** -0.5)
    bqkv = jax.random.normal(k2, (1, 3 * C), dtype=jnp.float32) * 0.02
    wfc = jax.random.normal(k3, (C, C), dtype=jnp.float32) * (C ** -0.5)
    bfc = jax.random.normal(k4, (1, C), dtype=jnp.float32) * 0.02

    out = mha_forward(x, wqkv, bqkv, wfc, bfc, num_heads=num_heads)
    out = jax.block_until_ready(out)

    ref = mha_reference(x, wqkv, bqkv, wfc, bfc, num_heads=num_heads)
    # bf16 MXU operands, bf16 exp on v6e/v7x and approx reciprocal -> relaxed
    # tolerance vs the f32 reference (inference-grade).
    np.testing.assert_allclose(np.asarray(out), np.asarray(ref),
                               rtol=4e-2, atol=4e-2)
    print("KERNEL_OK")
</pallas_src>

<mosaic_0001>
module attributes {stable_mosaic.version = 11 : i64} {
  func.func @_mha_kernel(%arg0: i32, %arg1: memref<2x16x32xbf16, #tpu.memory_space<vmem>>, %arg2: memref<32x96xbf16, #tpu.memory_space<vmem>>, %arg3: memref<1x96xf32, #tpu.memory_space<vmem>>, %arg4: memref<32x32xbf16, #tpu.memory_space<vmem>>, %arg5: memref<1x32xf32, #tpu.memory_space<vmem>>, %arg6: memref<2x16x32xf32, #tpu.memory_space<vmem>>, %arg7: memref<2x16x96xbf16, #tpu.memory_space<vmem>>, %arg8: memref<2x16x32xbf16, #tpu.memory_space<vmem>>) attributes {dimension_semantics = [#tpu.dimension_semantics<parallel>], iteration_bounds = array<i64: 1>, scalar_prefetch = 0 : i64, scratch_operands = 2 : i64, tpu.core_type = #tpu.core_type<tc>, window_params = [{transform_indices = @transform_0, window_bounds = array<i64: 2, 16, 32>}, {pipeline_mode = #tpu.pipeline_mode<synchronous>, transform_indices = @transform_1, window_bounds = array<i64: 32, 96>}, {pipeline_mode = #tpu.pipeline_mode<synchronous>, transform_indices = @transform_2, window_bounds = array<i64: 1, 96>}, {pipeline_mode = #tpu.pipeline_mode<synchronous>, transform_indices = @transform_3, window_bounds = array<i64: 32, 32>}, {pipeline_mode = #tpu.pipeline_mode<synchronous>, transform_indices = @transform_4, window_bounds = array<i64: 1, 32>}, {transform_indices = @transform_5, window_bounds = array<i64: 2, 16, 32>}]} {
    %c0 = arith.constant 0 : index
    %c0_0 = arith.constant 0 : index
    %c0_1 = arith.constant 0 : index
    %0 = vector.load %arg1[%c0, %c0_0, %c0_1] : memref<2x16x32xbf16, #tpu.memory_space<vmem>>, vector<2x16x32xbf16>
    %1 = vector.shape_cast %0 : vector<2x16x32xbf16> to vector<32x32xbf16>
    %c0_2 = arith.constant 0 : index
    %c0_3 = arith.constant 0 : index
    %2 = vector.load %arg2[%c0_2, %c0_3] : memref<32x96xbf16, #tpu.memory_space<vmem>>, vector<32x96xbf16>
    %cst = arith.constant dense<0.000000e+00> : vector<32x96xf32>
    %3 = tpu.matmul %1, %2, %cst {dimension_numbers = #tpu.dot_dimension_numbers<[1], [0], [0], [1], [0, 0, 1, 1], [], []>} : vector<32x32xbf16>, vector<32x96xbf16>, vector<32x96xf32> -> vector<32x96xf32>
    %c0_4 = arith.constant 0 : index
    %c0_5 = arith.constant 0 : index
    %4 = vector.load %arg3[%c0_4, %c0_5] : memref<1x96xf32, #tpu.memory_space<vmem>>, vector<1x96xf32>
    %5 = vector.shape_cast %4 : vector<1x96xf32> to vector<96xf32>
    %6 = vector.shape_cast %5 : vector<96xf32> to vector<1x96xf32>
    %7 = vector.broadcast %6 : vector<1x96xf32> to vector<32x96xf32>
    %8 = arith.addf %3, %7 : vector<32x96xf32>
    %9 = arith.truncf %8 : vector<32x96xf32> to vector<32x96xbf16>
    %10 = vector.shape_cast %9 : vector<32x96xbf16> to vector<2x16x96xbf16>
    %c0_6 = arith.constant 0 : index
    %c0_7 = arith.constant 0 : index
    %c0_8 = arith.constant 0 : index
    %11 = vector.load %arg7[%c0_6, %c0_7, %c0_8] : memref<2x16x96xbf16, #tpu.memory_space<vmem>>, vector<2x16x96xbf16>
    tpu.vector_store %arg7[%c0_6, %c0_7, %c0_8], %10 {strides = array<i32>} : memref<2x16x96xbf16, #tpu.memory_space<vmem>>, vector<2x16x96xbf16>,
    %12 = tpu.iota {dimensions = array<i32: 1>} : vector<1x16xi32>
    %c8_i32 = arith.constant 8 : i32
    %13 = vector.broadcast %c8_i32 : i32 to vector<1x16xi32>
    %14 = arith.cmpi slt, %12, %13 : vector<1x16xi32>
    %cst_9 = arith.constant 0.000000e+00 : f32
    %cst_10 = arith.constant -1.000000e+30 : f32
    %15 = vector.broadcast %cst_9 : f32 to vector<1x16xf32>
    %16 = vector.broadcast %cst_10 : f32 to vector<1x16xf32>
    %17 = arith.select %14, %15, %16 : vector<1x16xi1>, vector<1x16xf32>
    %c0_i32 = arith.constant 0 : i32
    %c2_i32 = arith.constant 2 : i32
    %18 = arith.addi %c0_i32, %c2_i32 : i32
    %c1_i32 = arith.constant 1 : i32
    scf.for %arg9 = %c0_i32 to %18 step %c1_i32  : i32 {
      %c1_i32_23 = arith.constant 1 : i32
      %30 = arith.muli %arg9, %c1_i32_23 : i32
      %c0_i32_24 = arith.constant 0 : i32
      %31 = arith.addi %c0_i32_24, %30 : i32
      %32 = arith.index_cast %31 : i32 to index
      %c0_25 = arith.constant 0 : index
      %c0_26 = arith.constant 0 : index
      %33 = vector.load %arg7[%32, %c0_25, %c0_26] : memref<2x16x96xbf16, #tpu.memory_space<vmem>>, vector<1x16x16xbf16>
      %34 = vector.shape_cast %33 : vector<1x16x16xbf16> to vector<16x16xbf16>
      %35 = arith.index_cast %31 : i32 to index
      %c0_27 = arith.constant 0 : index
      %c32 = arith.constant 32 : index
      %36 = vector.load %arg7[%35, %c0_27, %c32] : memref<2x16x96xbf16, #tpu.memory_space<vmem>>, vector<1x16x16xbf16>
      %37 = vector.shape_cast %36 : vector<1x16x16xbf16> to vector<16x16xbf16>
      %38 = arith.index_cast %31 : i32 to index
      %c0_28 = arith.constant 0 : index
      %c64 = arith.constant 64 : index
      %39 = vector.load %arg7[%38, %c0_28, %c64] : memref<2x16x96xbf16, #tpu.memory_space<vmem>>, vector<1x16x16xbf16>
      %40 = vector.shape_cast %39 : vector<1x16x16xbf16> to vector<16x16xbf16>
      %41 = vector.extract_strided_slice %34 {offsets = [0, 0], sizes = [16, 8], strides = [1, 1]} : vector<16x16xbf16> to vector<16x8xbf16>
      %42 = vector.extract_strided_slice %37 {offsets = [0, 0], sizes = [16, 8], strides = [1, 1]} : vector<16x16xbf16> to vector<16x8xbf16>
      %43 = vector.extract_strided_slice %40 {offsets = [0, 0], sizes = [16, 8], strides = [1, 1]} : vector<16x16xbf16> to vector<16x8xbf16>
      %cst_29 = arith.constant dense<0.000000e+00> : vector<16x16xf32>
      %44 = tpu.matmul %41, %42, %cst_29 {dimension_numbers = #tpu.dot_dimension_numbers<[1], [1], [0], [0], [0, 0, 1, 0], [], []>} : vector<16x8xbf16>, vector<16x8xbf16>, vector<16x16xf32> -> vector<16x16xf32>
      %45 = vector.broadcast %17 : vector<1x16xf32> to vector<16x16xf32>
      %46 = arith.addf %44, %45 : vector<16x16xf32>
      %cst_30 = arith.constant dense<0xFF800000> : vector<16xf32>
      %47 = vector.multi_reduction <maximumf>, %46, %cst_30 [1] : vector<16x16xf32> to vector<16xf32>
      %48 = vector.shape_cast %47 : vector<16xf32> to vector<16x1xf32>
      %49 = vector.broadcast %48 : vector<16x1xf32> to vector<16x16xf32>
      %50 = arith.subf %46, %49 : vector<16x16xf32>
      %51 = math.exp %50 : vector<16x16xf32>
      %cst_31 = arith.constant dense<0.000000e+00> : vector<16xf32>
      %52 = vector.multi_reduction <add>, %51, %cst_31 [1] : vector<16x16xf32> to vector<16xf32>
      %53 = vector.shape_cast %52 : vector<16xf32> to vector<16x1xf32>
      %54 = tpu.reciprocal %53 {approx = true} : vector<16x1xf32> -> vector<16x1xf32>
      %55 = arith.truncf %51 : vector<16x16xf32> to vector<16x16xbf16>
      %cst_32 = arith.constant dense<0.000000e+00> : vector<16x8xf32>
      %56 = tpu.matmul %55, %43, %cst_32 {dimension_numbers = #tpu.dot_dimension_numbers<[1], [0], [0], [1], [0, 0, 1, 1], [], []>} : vector<16x16xbf16>, vector<16x8xbf16>, vector<16x8xf32> -> vector<16x8xf32>
      %57 = vector.broadcast %54 : vector<16x1xf32> to vector<16x8xf32>
      %58 = arith.mulf %56, %57 : vector<16x8xf32>
      %59 = arith.truncf %58 : vector<16x8xf32> to vector<16x8xbf16>
      %60 = vector.extract_strided_slice %34 {offsets = [0, 8], sizes = [16, 8], strides = [1, 1]} : vector<16x16xbf16> to vector<16x8xbf16>
      %61 = vector.extract_strided_slice %37 {offsets = [0, 8], sizes = [16, 8], strides = [1, 1]} : vector<16x16xbf16> to vector<16x8xbf16>
      %62 = vector.extract_strided_slice %40 {offsets = [0, 8], sizes = [16, 8], strides = [1, 1]} : vector<16x16xbf16> to vector<16x8xbf16>
      %cst_33 = arith.constant dense<0.000000e+00> : vector<16x16xf32>
      %63 = tpu.matmul %60, %61, %cst_33 {dimension_numbers = #tpu.dot_dimension_numbers<[1], [1], [0], [0], [0, 0, 1, 0], [], []>} : vector<16x8xbf16>, vector<16x8xbf16>, vector<16x16xf32> -> vector<16x16xf32>
      %64 = vector.broadcast %17 : vector<1x16xf32> to vector<16x16xf32>
      %65 = arith.addf %63, %64 : vector<16x16xf32>
      %cst_34 = arith.constant dense<0xFF800000> : vector<16xf32>
      %66 = vector.multi_reduction <maximumf>, %65, %cst_34 [1] : vector<16x16xf32> to vector<16xf32>
      %67 = vector.shape_cast %66 : vector<16xf32> to vector<16x1xf32>
      %68 = vector.broadcast %67 : vector<16x1xf32> to vector<16x16xf32>
      %69 = arith.subf %65, %68 : vector<16x16xf32>
      %70 = math.exp %69 : vector<16x16xf32>
      %cst_35 = arith.constant dense<0.000000e+00> : vector<16xf32>
      %71 = vector.multi_reduction <add>, %70, %cst_35 [1] : vector<16x16xf32> to vector<16xf32>
      %72 = vector.shape_cast %71 : vector<16xf32> to vector<16x1xf32>
      %73 = tpu.reciprocal %72 {approx = true} : vector<16x1xf32> -> vector<16x1xf32>
      %74 = arith.truncf %70 : vector<16x16xf32> to vector<16x16xbf16>
      %cst_36 = arith.constant dense<0.000000e+00> : vector<16x8xf32>
      %75 = tpu.matmul %74, %62, %cst_36 {dimension_numbers = #tpu.dot_dimension_numbers<[1], [0], [0], [1], [0, 0, 1, 1], [], []>} : vector<16x16xbf16>, vector<16x8xbf16>, vector<16x8xf32> -> vector<16x8xf32>
      %76 = vector.broadcast %73 : vector<16x1xf32> to vector<16x8xf32>
      %77 = arith.mulf %75, %76 : vector<16x8xf32>
      %78 = arith.truncf %77 : vector<16x8xf32> to vector<16x8xbf16>
      %79 = tpu.concatenate %59, %78 in 1 : vector<16x8xbf16>, vector<16x8xbf16> -> vector<16x16xbf16>
      %80 = arith.index_cast %31 : i32 to index
      %c0_37 = arith.constant 0 : index
      %c0_38 = arith.constant 0 : index
      %81 = vector.load %arg8[%80, %c0_37, %c0_38] : memref<2x16x32xbf16, #tpu.memory_space<vmem>>, vector<1x16x16xbf16>
      %82 = vector.shape_cast %81 : vector<1x16x16xbf16> to vector<16x16xbf16>
      %83 = vector.shape_cast %79 : vector<16x16xbf16> to vector<1x16x16xbf16>
      tpu.vector_store %arg8[%80, %c0_37, %c0_38], %83 {strides = array<i32>} : memref<2x16x32xbf16, #tpu.memory_space<vmem>>, vector<1x16x16xbf16>,
      %84 = arith.index_cast %31 : i32 to index
      %c0_39 = arith.constant 0 : index
      %c16 = arith.constant 16 : index
      %85 = vector.load %arg7[%84, %c0_39, %c16] : memref<2x16x96xbf16, #tpu.memory_space<vmem>>, vector<1x16x16xbf16>
      %86 = vector.shape_cast %85 : vector<1x16x16xbf16> to vector<16x16xbf16>
      %87 = arith.index_cast %31 : i32 to index
      %c0_40 = arith.constant 0 : index
      %c48 = arith.constant 48 : index
      %88 = vector.load %arg7[%87, %c0_40, %c48] : memref<2x16x96xbf16, #tpu.memory_space<vmem>>, vector<1x16x16xbf16>
      %89 = vector.shape_cast %88 : vector<1x16x16xbf16> to vector<16x16xbf16>
      %90 = arith.index_cast %31 : i32 to index
      %c0_41 = arith.constant 0 : index
      %c80 = arith.constant 80 : index
      %91 = vector.load %arg7[%90, %c0_41, %c80] : memref<2x16x96xbf16, #tpu.memory_space<vmem>>, vector<1x16x16xbf16>
      %92 = vector.shape_cast %91 : vector<1x16x16xbf16> to vector<16x16xbf16>
      %93 = vector.extract_strided_slice %86 {offsets = [0, 0], sizes = [16, 8], strides = [1, 1]} : vector<16x16xbf16> to vector<16x8xbf16>
      %94 = vector.extract_strided_slice %89 {offsets = [0, 0], sizes = [16, 8], strides = [1, 1]} : vector<16x16xbf16> to vector<16x8xbf16>
      %95 = vector.extract_strided_slice %92 {offsets = [0, 0], sizes = [16, 8], strides = [1, 1]} : vector<16x16xbf16> to vector<16x8xbf16>
      %cst_42 = arith.constant dense<0.000000e+00> : vector<16x16xf32>
      %96 = tpu.matmul %93, %94, %cst_42 {dimension_numbers = #tpu.dot_dimension_numbers<[1], [1], [0], [0], [0, 0, 1, 0], [], []>} : vector<16x8xbf16>, vector<16x8xbf16>, vector<16x16xf32> -> vector<16x16xf32>
      %97 = vector.broadcast %17 : vector<1x16xf32> to vector<16x16xf32>
      %98 = arith.addf %96, %97 : vector<16x16xf32>
      %cst_43 = arith.constant dense<0xFF800000> : vector<16xf32>
      %99 = vector.multi_reduction <maximumf>, %98, %cst_43 [1] : vector<16x16xf32> to vector<16xf32>
      %100 = vector.shape_cast %99 : vector<16xf32> to vector<16x1xf32>
      %101 = vector.broadcast %100 : vector<16x1xf32> to vector<16x16xf32>
      %102 = arith.subf %98, %101 : vector<16x16xf32>
      %103 = math.exp %102 : vector<16x16xf32>
      %cst_44 = arith.constant dense<0.000000e+00> : vector<16xf32>
      %104 = vector.multi_reduction <add>, %103, %cst_44 [1] : vector<16x16xf32> to vector<16xf32>
      %105 = vector.shape_cast %104 : vector<16xf32> to vector<16x1xf32>
      %106 = tpu.reciprocal %105 {approx = true} : vector<16x1xf32> -> vector<16x1xf32>
      %107 = arith.truncf %103 : vector<16x16xf32> to vector<16x16xbf16>
      %cst_45 = arith.constant dense<0.000000e+00> : vector<16x8xf32>
      %108 = tpu.matmul %107, %95, %cst_45 {dimension_numbers = #tpu.dot_dimension_numbers<[1], [0], [0], [1], [0, 0, 1, 1], [], []>} : vector<16x16xbf16>, vector<16x8xbf16>, vector<16x8xf32> -> vector<16x8xf32>
      %109 = vector.broadcast %106 : vector<16x1xf32> to vector<16x8xf32>
      %110 = arith.mulf %108, %109 : vector<16x8xf32>
      %111 = arith.truncf %110 : vector<16x8xf32> to vector<16x8xbf16>
      %112 = vector.extract_strided_slice %86 {offsets = [0, 8], sizes = [16, 8], strides = [1, 1]} : vector<16x16xbf16> to vector<16x8xbf16>
      %113 = vector.extract_strided_slice %89 {offsets = [0, 8], sizes = [16, 8], strides = [1, 1]} : vector<16x16xbf16> to vector<16x8xbf16>
      %114 = vector.extract_strided_slice %92 {offsets = [0, 8], sizes = [16, 8], strides = [1, 1]} : vector<16x16xbf16> to vector<16x8xbf16>
      %cst_46 = arith.constant dense<0.000000e+00> : vector<16x16xf32>
      %115 = tpu.matmul %112, %113, %cst_46 {dimension_numbers = #tpu.dot_dimension_numbers<[1], [1], [0], [0], [0, 0, 1, 0], [], []>} : vector<16x8xbf16>, vector<16x8xbf16>, vector<16x16xf32> -> vector<16x16xf32>
      %116 = vector.broadcast %17 : vector<1x16xf32> to vector<16x16xf32>
      %117 = arith.addf %115, %116 : vector<16x16xf32>
      %cst_47 = arith.constant dense<0xFF800000> : vector<16xf32>
      %118 = vector.multi_reduction <maximumf>, %117, %cst_47 [1] : vector<16x16xf32> to vector<16xf32>
      %119 = vector.shape_cast %118 : vector<16xf32> to vector<16x1xf32>
      %120 = vector.broadcast %119 : vector<16x1xf32> to vector<16x16xf32>
      %121 = arith.subf %117, %120 : vector<16x16xf32>
      %122 = math.exp %121 : vector<16x16xf32>
      %cst_48 = arith.constant dense<0.000000e+00> : vector<16xf32>
      %123 = vector.multi_reduction <add>, %122, %cst_48 [1] : vector<16x16xf32> to vector<16xf32>
      %124 = vector.shape_cast %123 : vector<16xf32> to vector<16x1xf32>
      %125 = tpu.reciprocal %124 {approx = true} : vector<16x1xf32> -> vector<16x1xf32>
      %126 = arith.truncf %122 : vector<16x16xf32> to vector<16x16xbf16>
      %cst_49 = arith.constant dense<0.000000e+00> : vector<16x8xf32>
      %127 = tpu.matmul %126, %114, %cst_49 {dimension_numbers = #tpu.dot_dimension_numbers<[1], [0], [0], [1], [0, 0, 1, 1], [], []>} : vector<16x16xbf16>, vector<16x8xbf16>, vector<16x8xf32> -> vector<16x8xf32>
      %128 = vector.broadcast %125 : vector<16x1xf32> to vector<16x8xf32>
      %129 = arith.mulf %127, %128 : vector<16x8xf32>
      %130 = arith.truncf %129 : vector<16x8xf32> to vector<16x8xbf16>
      %131 = tpu.concatenate %111, %130 in 1 : vector<16x8xbf16>, vector<16x8xbf16> -> vector<16x16xbf16>
      %132 = arith.index_cast %31 : i32 to index
      %c0_50 = arith.constant 0 : index
      %c16_51 = arith.constant 16 : index
      %133 = vector.load %arg8[%132, %c0_50, %c16_51] : memref<2x16x32xbf16, #tpu.memory_space<vmem>>, vector<1x16x16xbf16>
      %134 = vector.shape_cast %133 : vector<1x16x16xbf16> to vector<16x16xbf16>
      %135 = vector.shape_cast %131 : vector<16x16xbf16> to vector<1x16x16xbf16>
      tpu.vector_store %arg8[%132, %c0_50, %c16_51], %135 {strides = array<i32>} : memref<2x16x32xbf16, #tpu.memory_space<vmem>>, vector<1x16x16xbf16>,
    }
    %c2_i32_11 = arith.constant 2 : i32
    %c0_12 = arith.constant 0 : index
    %c0_13 = arith.constant 0 : index
    %c0_14 = arith.constant 0 : index
    %19 = vector.load %arg8[%c0_12, %c0_13, %c0_14] : memref<2x16x32xbf16, #tpu.memory_space<vmem>>, vector<2x16x32xbf16>
    %20 = vector.shape_cast %19 : vector<2x16x32xbf16> to vector<32x32xbf16>
    %c0_15 = arith.constant 0 : index
    %c0_16 = arith.constant 0 : index
    %21 = vector.load %arg4[%c0_15, %c0_16] : memref<32x32xbf16, #tpu.memory_space<vmem>>, vector<32x32xbf16>
    %cst_17 = arith.constant dense<0.000000e+00> : vector<32x32xf32>
    %22 = tpu.matmul %20, %21, %cst_17 {dimension_numbers = #tpu.dot_dimension_numbers<[1], [0], [0], [1], [0, 0, 1, 1], [], []>} : vector<32x32xbf16>, vector<32x32xbf16>, vector<32x32xf32> -> vector<32x32xf32>
    %c0_18 = arith.constant 0 : index
    %c0_19 = arith.constant 0 : index
    %23 = vector.load %arg5[%c0_18, %c0_19] : memref<1x32xf32, #tpu.memory_space<vmem>>, vector<1x32xf32>
    %24 = vector.shape_cast %23 : vector<1x32xf32> to vector<32xf32>
    %25 = vector.shape_cast %24 : vector<32xf32> to vector<1x32xf32>
    %26 = vector.broadcast %25 : vector<1x32xf32> to vector<32x32xf32>
    %27 = arith.addf %22, %26 : vector<32x32xf32>
    %28 = vector.shape_cast %27 : vector<32x32xf32> to vector<2x16x32xf32>
    %c0_20 = arith.constant 0 : index
    %c0_21 = arith.constant 0 : index
    %c0_22 = arith.constant 0 : index
    %29 = vector.load %arg6[%c0_20, %c0_21, %c0_22] : memref<2x16x32xf32, #tpu.memory_space<vmem>>, vector<2x16x32xf32>
    tpu.vector_store %arg6[%c0_20, %c0_21, %c0_22], %28 {strides = array<i32>} : memref<2x16x32xf32, #tpu.memory_space<vmem>>, vector<2x16x32xf32>,
    return
  }
  func.func @transform_0(%arg0: i32) -> (i32, i32, i32) {
    %c0_i32 = arith.constant 0 : i32
    %c0_i32_0 = arith.constant 0 : i32
    %c0_i32_1 = arith.constant 0 : i32
    return %arg0, %c0_i32, %c0_i32_0 : i32, i32, i32
  }
  func.func @transform_1(%arg0: i32) -> (i32, i32) {
    %c0_i32 = arith.constant 0 : i32
    %c0_i32_0 = arith.constant 0 : i32
    %c0_i32_1 = arith.constant 0 : i32
    return %c0_i32, %c0_i32_0 : i32, i32
  }
  func.func @transform_2(%arg0: i32) -> (i32, i32) {
    %c0_i32 = arith.constant 0 : i32
    %c0_i32_0 = arith.constant 0 : i32
    %c0_i32_1 = arith.constant 0 : i32
    return %c0_i32, %c0_i32_0 : i32, i32
  }
  func.func @transform_3(%arg0: i32) -> (i32, i32) {
    %c0_i32 = arith.constant 0 : i32
    %c0_i32_0 = arith.constant 0 : i32
    %c0_i32_1 = arith.constant 0 : i32
    return %c0_i32, %c0_i32_0 : i32, i32
  }
  func.func @transform_4(%arg0: i32) -> (i32, i32) {
    %c0_i32 = arith.constant 0 : i32
    %c0_i32_0 = arith.constant 0 : i32
    %c0_i32_1 = arith.constant 0 : i32
    return %c0_i32, %c0_i32_0 : i32, i32
  }
  func.func @transform_5(%arg0: i32) -> (i32, i32, i32) {
    %c0_i32 = arith.constant 0 : i32
    %c0_i32_0 = arith.constant 0 : i32
    %c0_i32_1 = arith.constant 0 : i32
    return %arg0, %c0_i32, %c0_i32_0 : i32, i32, i32
  }
}

module attributes {stable_mosaic.version = 11 : i64} {
  func.func @_mha_kernel(%arg0: i32, %arg1: memref<2x16x32xbf16, #tpu.memory_space<vmem>>, %arg2: memref<32x96xbf16, #tpu.memory_space<vmem>>, %arg3: memref<1x96xf32, #tpu.memory_space<vmem>>, %arg4: memref<32x32xbf16, #tpu.memory_space<vmem>>, %arg5: memref<1x32xf32, #tpu.memory_space<vmem>>, %arg6: memref<2x16x32xf32, #tpu.memory_space<vmem>>, %arg7: memref<2x16x96xbf16, #tpu.memory_space<vmem>>, %arg8: memref<2x16x32xbf16, #tpu.memory_space<vmem>>) attributes {dimension_semantics = [#tpu.dimension_semantics<parallel>], iteration_bounds = array<i64: 1>, scalar_prefetch = 0 : i64, scratch_operands = 2 : i64, tpu.core_type = #tpu.core_type<tc>, window_params = [{transform_indices = @transform_0, window_bounds = array<i64: 2, 16, 32>}, {pipeline_mode = #tpu.pipeline_mode<synchronous>, transform_indices = @transform_1, window_bounds = array<i64: 32, 96>}, {pipeline_mode = #tpu.pipeline_mode<synchronous>, transform_indices = @transform_2, window_bounds = array<i64: 1, 96>}, {pipeline_mode = #tpu.pipeline_mode<synchronous>, transform_indices = @transform_3, window_bounds = array<i64: 32, 32>}, {pipeline_mode = #tpu.pipeline_mode<synchronous>, transform_indices = @transform_4, window_bounds = array<i64: 1, 32>}, {transform_indices = @transform_5, window_bounds = array<i64: 2, 16, 32>}]} {
    %c0 = arith.constant 0 : index
    %c0_0 = arith.constant 0 : index
    %c0_1 = arith.constant 0 : index
    %0 = vector.load %arg1[%c0, %c0_0, %c0_1] : memref<2x16x32xbf16, #tpu.memory_space<vmem>>, vector<2x16x32xbf16>
    %1 = vector.shape_cast %0 : vector<2x16x32xbf16> to vector<32x32xbf16>
    %c0_2 = arith.constant 0 : index
    %c0_3 = arith.constant 0 : index
    %2 = vector.load %arg2[%c0_2, %c0_3] : memref<32x96xbf16, #tpu.memory_space<vmem>>, vector<32x96xbf16>
    %cst = arith.constant dense<0.000000e+00> : vector<32x96xf32>
    %3 = tpu.matmul %1, %2, %cst {dimension_numbers = #tpu.dot_dimension_numbers<[1], [0], [0], [1], [0, 0, 1, 1], [], []>} : vector<32x32xbf16>, vector<32x96xbf16>, vector<32x96xf32> -> vector<32x96xf32>
    %c0_4 = arith.constant 0 : index
    %c0_5 = arith.constant 0 : index
    %4 = vector.load %arg3[%c0_4, %c0_5] : memref<1x96xf32, #tpu.memory_space<vmem>>, vector<1x96xf32>
    %5 = vector.shape_cast %4 : vector<1x96xf32> to vector<96xf32>
    %6 = vector.shape_cast %5 : vector<96xf32> to vector<1x96xf32>
    %7 = vector.broadcast %6 : vector<1x96xf32> to vector<32x96xf32>
    %8 = arith.addf %3, %7 : vector<32x96xf32>
    %9 = arith.truncf %8 : vector<32x96xf32> to vector<32x96xbf16>
    %10 = vector.shape_cast %9 : vector<32x96xbf16> to vector<2x16x96xbf16>
    %c0_6 = arith.constant 0 : index
    %c0_7 = arith.constant 0 : index
    %c0_8 = arith.constant 0 : index
    %11 = vector.load %arg7[%c0_6, %c0_7, %c0_8] : memref<2x16x96xbf16, #tpu.memory_space<vmem>>, vector<2x16x96xbf16>
    tpu.vector_store %arg7[%c0_6, %c0_7, %c0_8], %10 {strides = array<i32>} : memref<2x16x96xbf16, #tpu.memory_space<vmem>>, vector<2x16x96xbf16>,
    %12 = tpu.iota {dimensions = array<i32: 1>} : vector<1x16xi32>
    %c8_i32 = arith.constant 8 : i32
    %13 = vector.broadcast %c8_i32 : i32 to vector<1x16xi32>
    %14 = arith.cmpi slt, %12, %13 : vector<1x16xi32>
    %cst_9 = arith.constant 0.000000e+00 : f32
    %cst_10 = arith.constant -1.000000e+30 : f32
    %15 = vector.broadcast %cst_9 : f32 to vector<1x16xf32>
    %16 = vector.broadcast %cst_10 : f32 to vector<1x16xf32>
    %17 = arith.select %14, %15, %16 : vector<1x16xi1>, vector<1x16xf32>
    %c0_i32 = arith.constant 0 : i32
    %c2_i32 = arith.constant 2 : i32
    %18 = arith.addi %c0_i32, %c2_i32 : i32
    %c1_i32 = arith.constant 1 : i32
    scf.for %arg9 = %c0_i32 to %18 step %c1_i32  : i32 {
      %c1_i32_23 = arith.constant 1 : i32
      %30 = arith.muli %arg9, %c1_i32_23 : i32
      %c0_i32_24 = arith.constant 0 : i32
      %31 = arith.addi %c0_i32_24, %30 : i32
      %32 = arith.index_cast %31 : i32 to index
      %c0_25 = arith.constant 0 : index
      %c0_26 = arith.constant 0 : index
      %33 = vector.load %arg7[%32, %c0_25, %c0_26] : memref<2x16x96xbf16, #tpu.memory_space<vmem>>, vector<1x16x16xbf16>
      %34 = vector.shape_cast %33 : vector<1x16x16xbf16> to vector<16x16xbf16>
      %35 = arith.index_cast %31 : i32 to index
      %c0_27 = arith.constant 0 : index
      %c32 = arith.constant 32 : index
      %36 = vector.load %arg7[%35, %c0_27, %c32] : memref<2x16x96xbf16, #tpu.memory_space<vmem>>, vector<1x16x16xbf16>
      %37 = vector.shape_cast %36 : vector<1x16x16xbf16> to vector<16x16xbf16>
      %38 = arith.index_cast %31 : i32 to index
      %c0_28 = arith.constant 0 : index
      %c64 = arith.constant 64 : index
      %39 = vector.load %arg7[%38, %c0_28, %c64] : memref<2x16x96xbf16, #tpu.memory_space<vmem>>, vector<1x16x16xbf16>
      %40 = vector.shape_cast %39 : vector<1x16x16xbf16> to vector<16x16xbf16>
      %41 = vector.extract_strided_slice %34 {offsets = [0, 0], sizes = [16, 8], strides = [1, 1]} : vector<16x16xbf16> to vector<16x8xbf16>
      %42 = vector.extract_strided_slice %37 {offsets = [0, 0], sizes = [16, 8], strides = [1, 1]} : vector<16x16xbf16> to vector<16x8xbf16>
      %43 = vector.extract_strided_slice %40 {offsets = [0, 0], sizes = [16, 8], strides = [1, 1]} : vector<16x16xbf16> to vector<16x8xbf16>
      %cst_29 = arith.constant dense<0.000000e+00> : vector<16x16xf32>
      %44 = tpu.matmul %41, %42, %cst_29 {dimension_numbers = #tpu.dot_dimension_numbers<[1], [1], [0], [0], [0, 0, 1, 0], [], []>} : vector<16x8xbf16>, vector<16x8xbf16>, vector<16x16xf32> -> vector<16x16xf32>
      %45 = vector.broadcast %17 : vector<1x16xf32> to vector<16x16xf32>
      %46 = arith.addf %44, %45 : vector<16x16xf32>
      %cst_30 = arith.constant dense<0xFF800000> : vector<16xf32>
      %47 = vector.multi_reduction <maximumf>, %46, %cst_30 [1] : vector<16x16xf32> to vector<16xf32>
      %48 = vector.shape_cast %47 : vector<16xf32> to vector<16x1xf32>
      %49 = vector.broadcast %48 : vector<16x1xf32> to vector<16x16xf32>
      %50 = arith.subf %46, %49 : vector<16x16xf32>
      %51 = math.exp %50 : vector<16x16xf32>
      %cst_31 = arith.constant dense<0.000000e+00> : vector<16xf32>
      %52 = vector.multi_reduction <add>, %51, %cst_31 [1] : vector<16x16xf32> to vector<16xf32>
      %53 = vector.shape_cast %52 : vector<16xf32> to vector<16x1xf32>
      %54 = tpu.reciprocal %53 {approx = true} : vector<16x1xf32> -> vector<16x1xf32>
      %55 = arith.truncf %51 : vector<16x16xf32> to vector<16x16xbf16>
      %cst_32 = arith.constant dense<0.000000e+00> : vector<16x8xf32>
      %56 = tpu.matmul %55, %43, %cst_32 {dimension_numbers = #tpu.dot_dimension_numbers<[1], [0], [0], [1], [0, 0, 1, 1], [], []>} : vector<16x16xbf16>, vector<16x8xbf16>, vector<16x8xf32> -> vector<16x8xf32>
      %57 = vector.broadcast %54 : vector<16x1xf32> to vector<16x8xf32>
      %58 = arith.mulf %56, %57 : vector<16x8xf32>
      %59 = arith.truncf %58 : vector<16x8xf32> to vector<16x8xbf16>
      %60 = vector.extract_strided_slice %34 {offsets = [0, 8], sizes = [16, 8], strides = [1, 1]} : vector<16x16xbf16> to vector<16x8xbf16>
      %61 = vector.extract_strided_slice %37 {offsets = [0, 8], sizes = [16, 8], strides = [1, 1]} : vector<16x16xbf16> to vector<16x8xbf16>
      %62 = vector.extract_strided_slice %40 {offsets = [0, 8], sizes = [16, 8], strides = [1, 1]} : vector<16x16xbf16> to vector<16x8xbf16>
      %cst_33 = arith.constant dense<0.000000e+00> : vector<16x16xf32>
      %63 = tpu.matmul %60, %61, %cst_33 {dimension_numbers = #tpu.dot_dimension_numbers<[1], [1], [0], [0], [0, 0, 1, 0], [], []>} : vector<16x8xbf16>, vector<16x8xbf16>, vector<16x16xf32> -> vector<16x16xf32>
      %64 = vector.broadcast %17 : vector<1x16xf32> to vector<16x16xf32>
      %65 = arith.addf %63, %64 : vector<16x16xf32>
      %cst_34 = arith.constant dense<0xFF800000> : vector<16xf32>
      %66 = vector.multi_reduction <maximumf>, %65, %cst_34 [1] : vector<16x16xf32> to vector<16xf32>
      %67 = vector.shape_cast %66 : vector<16xf32> to vector<16x1xf32>
      %68 = vector.broadcast %67 : vector<16x1xf32> to vector<16x16xf32>
      %69 = arith.subf %65, %68 : vector<16x16xf32>
      %70 = math.exp %69 : vector<16x16xf32>
      %cst_35 = arith.constant dense<0.000000e+00> : vector<16xf32>
      %71 = vector.multi_reduction <add>, %70, %cst_35 [1] : vector<16x16xf32> to vector<16xf32>
      %72 = vector.shape_cast %71 : vector<16xf32> to vector<16x1xf32>
      %73 = tpu.reciprocal %72 {approx = true} : vector<16x1xf32> -> vector<16x1xf32>
      %74 = arith.truncf %70 : vector<16x16xf32> to vector<16x16xbf16>
      %cst_36 = arith.constant dense<0.000000e+00> : vector<16x8xf32>
      %75 = tpu.matmul %74, %62, %cst_36 {dimension_numbers = #tpu.dot_dimension_numbers<[1], [0], [0], [1], [0, 0, 1, 1], [], []>} : vector<16x16xbf16>, vector<16x8xbf16>, vector<16x8xf32> -> vector<16x8xf32>
      %76 = vector.broadcast %73 : vector<16x1xf32> to vector<16x8xf32>
      %77 = arith.mulf %75, %76 : vector<16x8xf32>
      %78 = arith.truncf %77 : vector<16x8xf32> to vector<16x8xbf16>
      %79 = tpu.concatenate %59, %78 in 1 : vector<16x8xbf16>, vector<16x8xbf16> -> vector<16x16xbf16>
      %80 = arith.index_cast %31 : i32 to index
      %c0_37 = arith.constant 0 : index
      %c0_38 = arith.constant 0 : index
      %81 = vector.load %arg8[%80, %c0_37, %c0_38] : memref<2x16x32xbf16, #tpu.memory_space<vmem>>, vector<1x16x16xbf16>
      %82 = vector.shape_cast %81 : vector<1x16x16xbf16> to vector<16x16xbf16>
      %83 = vector.shape_cast %79 : vector<16x16xbf16> to vector<1x16x16xbf16>
      tpu.vector_store %arg8[%80, %c0_37, %c0_38], %83 {strides = array<i32>} : memref<2x16x32xbf16, #tpu.memory_space<vmem>>, vector<1x16x16xbf16>,
      %84 = arith.index_cast %31 : i32 to index
      %c0_39 = arith.constant 0 : index
      %c16 = arith.constant 16 : index
      %85 = vector.load %arg7[%84, %c0_39, %c16] : memref<2x16x96xbf16, #tpu.memory_space<vmem>>, vector<1x16x16xbf16>
      %86 = vector.shape_cast %85 : vector<1x16x16xbf16> to vector<16x16xbf16>
      %87 = arith.index_cast %31 : i32 to index
      %c0_40 = arith.constant 0 : index
      %c48 = arith.constant 48 : index
      %88 = vector.load %arg7[%87, %c0_40, %c48] : memref<2x16x96xbf16, #tpu.memory_space<vmem>>, vector<1x16x16xbf16>
      %89 = vector.shape_cast %88 : vector<1x16x16xbf16> to vector<16x16xbf16>
      %90 = arith.index_cast %31 : i32 to index
      %c0_41 = arith.constant 0 : index
      %c80 = arith.constant 80 : index
      %91 = vector.load %arg7[%90, %c0_41, %c80] : memref<2x16x96xbf16, #tpu.memory_space<vmem>>, vector<1x16x16xbf16>
      %92 = vector.shape_cast %91 : vector<1x16x16xbf16> to vector<16x16xbf16>
      %93 = vector.extract_strided_slice %86 {offsets = [0, 0], sizes = [16, 8], strides = [1, 1]} : vector<16x16xbf16> to vector<16x8xbf16>
      %94 = vector.extract_strided_slice %89 {offsets = [0, 0], sizes = [16, 8], strides = [1, 1]} : vector<16x16xbf16> to vector<16x8xbf16>
      %95 = vector.extract_strided_slice %92 {offsets = [0, 0], sizes = [16, 8], strides = [1, 1]} : vector<16x16xbf16> to vector<16x8xbf16>
      %cst_42 = arith.constant dense<0.000000e+00> : vector<16x16xf32>
      %96 = tpu.matmul %93, %94, %cst_42 {dimension_numbers = #tpu.dot_dimension_numbers<[1], [1], [0], [0], [0, 0, 1, 0], [], []>} : vector<16x8xbf16>, vector<16x8xbf16>, vector<16x16xf32> -> vector<16x16xf32>
      %97 = vector.broadcast %17 : vector<1x16xf32> to vector<16x16xf32>
      %98 = arith.addf %96, %97 : vector<16x16xf32>
      %cst_43 = arith.constant dense<0xFF800000> : vector<16xf32>
      %99 = vector.multi_reduction <maximumf>, %98, %cst_43 [1] : vector<16x16xf32> to vector<16xf32>
      %100 = vector.shape_cast %99 : vector<16xf32> to vector<16x1xf32>
      %101 = vector.broadcast %100 : vector<16x1xf32> to vector<16x16xf32>
      %102 = arith.subf %98, %101 : vector<16x16xf32>
      %103 = math.exp %102 : vector<16x16xf32>
      %cst_44 = arith.constant dense<0.000000e+00> : vector<16xf32>
      %104 = vector.multi_reduction <add>, %103, %cst_44 [1] : vector<16x16xf32> to vector<16xf32>
      %105 = vector.shape_cast %104 : vector<16xf32> to vector<16x1xf32>
      %106 = tpu.reciprocal %105 {approx = true} : vector<16x1xf32> -> vector<16x1xf32>
      %107 = arith.truncf %103 : vector<16x16xf32> to vector<16x16xbf16>
      %cst_45 = arith.constant dense<0.000000e+00> : vector<16x8xf32>
      %108 = tpu.matmul %107, %95, %cst_45 {dimension_numbers = #tpu.dot_dimension_numbers<[1], [0], [0], [1], [0, 0, 1, 1], [], []>} : vector<16x16xbf16>, vector<16x8xbf16>, vector<16x8xf32> -> vector<16x8xf32>
      %109 = vector.broadcast %106 : vector<16x1xf32> to vector<16x8xf32>
      %110 = arith.mulf %108, %109 : vector<16x8xf32>
      %111 = arith.truncf %110 : vector<16x8xf32> to vector<16x8xbf16>
      %112 = vector.extract_strided_slice %86 {offsets = [0, 8], sizes = [16, 8], strides = [1, 1]} : vector<16x16xbf16> to vector<16x8xbf16>
      %113 = vector.extract_strided_slice %89 {offsets = [0, 8], sizes = [16, 8], strides = [1, 1]} : vector<16x16xbf16> to vector<16x8xbf16>
      %114 = vector.extract_strided_slice %92 {offsets = [0, 8], sizes = [16, 8], strides = [1, 1]} : vector<16x16xbf16> to vector<16x8xbf16>
      %cst_46 = arith.constant dense<0.000000e+00> : vector<16x16xf32>
      %115 = tpu.matmul %112, %113, %cst_46 {dimension_numbers = #tpu.dot_dimension_numbers<[1], [1], [0], [0], [0, 0, 1, 0], [], []>} : vector<16x8xbf16>, vector<16x8xbf16>, vector<16x16xf32> -> vector<16x16xf32>
      %116 = vector.broadcast %17 : vector<1x16xf32> to vector<16x16xf32>
      %117 = arith.addf %115, %116 : vector<16x16xf32>
      %cst_47 = arith.constant dense<0xFF800000> : vector<16xf32>
      %118 = vector.multi_reduction <maximumf>, %117, %cst_47 [1] : vector<16x16xf32> to vector<16xf32>
      %119 = vector.shape_cast %118 : vector<16xf32> to vector<16x1xf32>
      %120 = vector.broadcast %119 : vector<16x1xf32> to vector<16x16xf32>
      %121 = arith.subf %117, %120 : vector<16x16xf32>
      %122 = math.exp %121 : vector<16x16xf32>
      %cst_48 = arith.constant dense<0.000000e+00> : vector<16xf32>
      %123 = vector.multi_reduction <add>, %122, %cst_48 [1] : vector<16x16xf32> to vector<16xf32>
      %124 = vector.shape_cast %123 : vector<16xf32> to vector<16x1xf32>
      %125 = tpu.reciprocal %124 {approx = true} : vector<16x1xf32> -> vector<16x1xf32>
      %126 = arith.truncf %122 : vector<16x16xf32> to vector<16x16xbf16>
      %cst_49 = arith.constant dense<0.000000e+00> : vector<16x8xf32>
      %127 = tpu.matmul %126, %114, %cst_49 {dimension_numbers = #tpu.dot_dimension_numbers<[1], [0], [0], [1], [0, 0, 1, 1], [], []>} : vector<16x16xbf16>, vector<16x8xbf16>, vector<16x8xf32> -> vector<16x8xf32>
      %128 = vector.broadcast %125 : vector<16x1xf32> to vector<16x8xf32>
      %129 = arith.mulf %127, %128 : vector<16x8xf32>
      %130 = arith.truncf %129 : vector<16x8xf32> to vector<16x8xbf16>
      %131 = tpu.concatenate %111, %130 in 1 : vector<16x8xbf16>, vector<16x8xbf16> -> vector<16x16xbf16>
      %132 = arith.index_cast %31 : i32 to index
      %c0_50 = arith.constant 0 : index
      %c16_51 = arith.constant 16 : index
      %133 = vector.load %arg8[%132, %c0_50, %c16_51] : memref<2x16x32xbf16, #tpu.memory_space<vmem>>, vector<1x16x16xbf16>
      %134 = vector.shape_cast %133 : vector<1x16x16xbf16> to vector<16x16xbf16>
      %135 = vector.shape_cast %131 : vector<16x16xbf16> to vector<1x16x16xbf16>
      tpu.vector_store %arg8[%132, %c0_50, %c16_51], %135 {strides = array<i32>} : memref<2x16x32xbf16, #tpu.memory_space<vmem>>, vector<1x16x16xbf16>,
    }
    %c2_i32_11 = arith.constant 2 : i32
    %c0_12 = arith.constant 0 : index
    %c0_13 = arith.constant 0 : index
    %c0_14 = arith.constant 0 : index
    %19 = vector.load %arg8[%c0_12, %c0_13, %c0_14] : memref<2x16x32xbf16, #tpu.memory_space<vmem>>, vector<2x16x32xbf16>
    %20 = vector.shape_cast %19 : vector<2x16x32xbf16> to vector<32x32xbf16>
    %c0_15 = arith.constant 0 : index
    %c0_16 = arith.constant 0 : index
    %21 = vector.load %arg4[%c0_15, %c0_16] : memref<32x32xbf16, #tpu.memory_space<vmem>>, vector<32x32xbf16>
    %cst_17 = arith.constant dense<0.000000e+00> : vector<32x32xf32>
    %22 = tpu.matmul %20, %21, %cst_17 {dimension_numbers = #tpu.dot_dimension_numbers<[1], [0], [0], [1], [0, 0, 1, 1], [], []>} : vector<32x32xbf16>, vector<32x32xbf16>, vector<32x32xf32> -> vector<32x32xf32>
    %c0_18 = arith.constant 0 : index
    %c0_19 = arith.constant 0 : index
    %23 = vector.load %arg5[%c0_18, %c0_19] : memref<1x32xf32, #tpu.memory_space<vmem>>, vector<1x32xf32>
    %24 = vector.shape_cast %23 : vector<1x32xf32> to vector<32xf32>
    %25 = vector.shape_cast %24 : vector<32xf32> to vector<1x32xf32>
    %26 = vector.broadcast %25 : vector<1x32xf32> to vector<32x32xf32>
    %27 = arith.addf %22, %26 : vector<32x32xf32>
    %28 = vector.shape_cast %27 : vector<32x32xf32> to vector<2x16x32xf32>
    %c0_20 = arith.constant 0 : index
    %c0_21 = arith.constant 0 : index
    %c0_22 = arith.constant 0 : index
    %29 = vector.load %arg6[%c0_20, %c0_21, %c0_22] : memref<2x16x32xf32, #tpu.memory_space<vmem>>, vector<2x16x32xf32>
    tpu.vector_store %arg6[%c0_20, %c0_21, %c0_22], %28 {strides = array<i32>} : memref<2x16x32xf32, #tpu.memory_space<vmem>>, vector<2x16x32xf32>,
    return
  }
  func.func @transform_0(%arg0: i32) -> (i32, i32, i32) {
    %c0_i32 = arith.constant 0 : i32
    %c0_i32_0 = arith.constant 0 : i32
    %c0_i32_1 = arith.constant 0 : i32
    return %arg0, %c0_i32, %c0_i32_0 : i32, i32, i32
  }
  func.func @transform_1(%arg0: i32) -> (i32, i32) {
    %c0_i32 = arith.constant 0 : i32
    %c0_i32_0 = arith.constant 0 : i32
    %c0_i32_1 = arith.constant 0 : i32
    return %c0_i32, %c0_i32_0 : i32, i32
  }
  func.func @transform_2(%arg0: i32) -> (i32, i32) {
    %c0_i32 = arith.constant 0 : i32
    %c0_i32_0 = arith.constant 0 : i32
    %c0_i32_1 = arith.constant 0 : i32
    return %c0_i32, %c0_i32_0 : i32, i32
  }
  func.func @transform_3(%arg0: i32) -> (i32, i32) {
    %c0_i32 = arith.constant 0 : i32
    %c0_i32_0 = arith.constant 0 : i32
    %c0_i32_1 = arith.constant 0 : i32
    return %c0_i32, %c0_i32_0 : i32, i32
  }
  func.func @transform_4(%arg0: i32) -> (i32, i32) {
    %c0_i32 = arith.constant 0 : i32
    %c0_i32_0 = arith.constant 0 : i32
    %c0_i32_1 = arith.constant 0 : i32
    return %c0_i32, %c0_i32_0 : i32, i32
  }
  func.func @transform_5(%arg0: i32) -> (i32, i32, i32) {
    %c0_i32 = arith.constant 0 : i32
    %c0_i32_0 = arith.constant 0 : i32
    %c0_i32_1 = arith.constant 0 : i32
    return %arg0, %c0_i32, %c0_i32_0 : i32, i32, i32
  }
}

</mosaic_0001>

<bundles_post_ra>
// kernel: tpu_custom_call.1
= control target key start
LH: loop header
LB: loop body
LE: loop exit
PB: predicated region body
PF: predicated region fallthrough
CT: control target
= control target key end

     0   :  { %10 = vsyncpa [#allocation5], 0  ;;  %s1337_s0 = inlined_call_operand.hbm [shape: bf16[2,16,32], index: 0, kind: input, shape index: {}]   ;;  %s1338_s1 = inlined_call_operand.hbm [shape: bf16[32,96], index: 1, kind: input, shape index: {}]   ;;  %s1339_s2 = inlined_call_operand.vmem [shape: f32[1,96], index: 2, kind: input, shape index: {}]   ;;  %s1340_s3 = inlined_call_operand.hbm [shape: bf16[32,32], index: 3, kind: input, shape index: {}]   ;;  %s1341_s4 = inlined_call_operand.vmem [shape: f32[1,32], index: 4, kind: input, shape index: {}]   ;;  %s1342_s5 = inlined_call_operand.hbm [shape: f32[2,16,32], index: 5, kind: output, shape index: {}]  }
   0x1   :  { %11 = vsyncpa [#allocation8], 0 }
   0x2   :  { %12 = vsyncpa [#allocation6], 0  ;;  %s1150_s18 = smov [#allocation7]   ;;  %s1151_s20 = smov [#allocation4]  }
   0x3   :  { %s30_s19 = sshll.u32 %s1150_s18, 4  ;;  %s18_s21 = sshll.u32 %s1151_s20, 4  ;;  %s31_s19 = int_to_ptr.vmem [resolvable:$true] %s30_s19  ;;  %s19_s21 = int_to_ptr.vmem [resolvable:$true] %s18_s21 }
   0x4   :  { %s1064_s22 = scalar_lea.vmem %s31_s19, 256  ;;  %p1069_p1 = scmp.lt.s32.totalorder %s31_s19, %s31_s19 }
   0x5   :  { %p1065_p0 = scmp.ne.s32.totalorder %s31_s19, %s1064_s22  ;;  %p1070_p2 = scmp.lt.s32.totalorder %s1064_s22, %s1064_s22 }
   0x7   :  { %p1071_p3 = por %p1070_p2, %p1069_p1 }
   0x9   :  { %p1072_p4 = pnand %p1071_p3, %p1065_p0 }
   0xb   :  { %1075 = shalt.err (!%p1072_p4)
}
   0xc   :  { %s1152_s23 = smov 64   ;;  %s1153_s24 = smov 4  }
   0xd   :  { %36 = dma.hbm_to_vmem [thread:$0]  %s1338_s1, 256, %s31_s19, [#allocation8], %s1152_s23, %s1152_s23, %s1153_s24  }
   0xe   :  { %s1084_s27 = scalar_lea.vmem %s19_s21, 256  ;;  %p1089_p6 = scmp.lt.s32.totalorder %s19_s21, %s19_s21 }
   0xf   :  { %p1085_p5 = scmp.ne.s32.totalorder %s19_s21, %s1084_s27  ;;  %p1090_p7 = scmp.lt.s32.totalorder %s1084_s27, %s1084_s27 }
  0x11   :  { %p1091_p8 = por %p1090_p7, %p1089_p6 }
  0x13   :  { %p1092_p9 = pnand %p1091_p8, %p1085_p5 }
  0x15   :  { %1095 = shalt.err (!%p1092_p9)
}
  0x16   :  { %24 = dma.hbm_to_vmem [thread:$0]  %s1337_s0, 256, %s19_s21, [#allocation5], %s1152_s23, %s1152_s23, %s1153_s24  }
  0x17   :  { %s1154_s30 = smov [#allocation9]  }
  0x18   :  { %s44_s6 = sshll.u32 %s1154_s30, 4  ;;  %s45_s6 = int_to_ptr.vmem [resolvable:$true] %s44_s6 }
  0x19   :  { %s1104_s7 = scalar_lea.vmem %s45_s6, 256  ;;  %p1109_p11 = scmp.lt.s32.totalorder %s45_s6, %s45_s6 }
  0x1a   :  { %p1105_p10 = scmp.ne.s32.totalorder %s45_s6, %s1104_s7  ;;  %p1110_p12 = scmp.lt.s32.totalorder %s1104_s7, %s1104_s7 }
  0x1c   :  { %p1111_p13 = por %p1110_p12, %p1109_p11 }
  0x1e   :  { %p1112_p0 = pnand %p1111_p13, %p1105_p10 }
  0x20   :  { %1115 = shalt.err (!%p1112_p0)
}
  0x21   :  { %50 = dma.hbm_to_vmem [thread:$0]  %s1340_s3, 256, %s45_s6, [#allocation8], %s1152_s23, %s1152_s23, %s1153_s24  }
  0x22   :  { %1140 = dma.done.wait [#allocation5], 256  }
  0x23   :  { %1141 = vsyncadd [#allocation5], 4294967040 }
  0x24   :  { %1142 = dma.done.wait [#allocation8], 512  }
  0x25   :  { %1143 = vsyncadd [#allocation8], 4294966784  ;;  %v1014_v0 = vld [vmem:[#allocation7 + $0x8] sm:$0xff]   ;;  %v1015_v1 = vld [vmem:[#allocation7] sm:$0xff]   ;;  %vm100_vm0 = vcmask 261120   ;;  %v177_v4 = vlaneseq  ;;  %vm172_vm2 = vcmask 781312  }
  0x26   :  { %918 = vmatprep.subr.bf16.mxu0 %v1014_v0  ;;  %v1016_v2 = vld [vmem:[#allocation4] sm:$0xff]   ;;  %v1017_v3 = vld [vmem:[#allocation4 + $0x8] sm:$0xff]   ;;  %v1155_v6 = vmov -1e+30   ;;  %s1220_s9 = smov 0  }
  0x27   :  { %919 = vmatpush3.bf16.msra.mxu0 %v1014_v0  ;;  %922 = vmatprep.mubr.msk.bf16.mxu0 %vm100_vm0, %v1016_v2  ;;  %v178_v5 = vand.u32 127, %v177_v4  ;;  %v853_v8 = vld [vmem:[%s1339_s2] ss:$0 sm:$0xff] }
  0x28   :  { %920 = vmatprep.subr.bf16.mxu0 %v1015_v1 }
  0x29   :  { %vm179_vm1 = vcmp.lt.s32.totalorder %v178_v5, 8 }
  0x2a   :  { %v1215_v7 = vsel %vm179_vm1, 0.0, %v1155_v6 }
  0x2b   :  { %921 = vmatpush3.bf16.msra.mxu0 %v1015_v1 }
  0x2e   :  { %923 = vmatmul.mubr.msk.bf16.vlgmr.msra.gmra.mxu0 %vm100_vm0, %v1017_v3 }
  0xee   :  { %v924_v9 = vpop.f32.mrf.mxu0 }
  0xef   :  { %v150_v10 = vadd.f32 %v924_v9, %v853_v8 }
  0xf0   :  { %v141_v11 = vpop.f32.mrf.mxu0 }
  0xf1   :  { %v890_v12 = vpack.c.bf16 %v150_v10, %v150_v10  ;;  %v142_v13 = vadd.f32 %v853_v8, %v141_v11 }
  0xf2   :  { %v925_v14 = vpop.f32.mrf.mxu0 }
  0xf3   :  { %175 = vst.msk [vmem:[#allocation2 + $0x8] sm:$0xf] %vm172_vm2, %v890_v12  ;;  %v888_v15 = vpack.c.bf16 %v142_v13, %v142_v13  ;;  %v153_v16 = vadd.f32 %v925_v14, %v853_v8 }
  0xf4   :  { %v144_v17 = vpop.f32.mrf.mxu0 }
  0xf5   :  { %173 = vst.msk [vmem:[#allocation2] sm:$0xf] %vm172_vm2, %v888_v15  ;;  %v891_v18 = vpack.c.bf16 %v153_v16, %v153_v16  ;;  %v145_v19 = vadd.f32 %v853_v8, %v144_v17 }
  0xf7   :  { %176 = vst.msk [vmem:[#allocation2 + $0xc] sm:$0xf] %vm172_vm2, %v891_v18  ;;  %v889_v20 = vpack.c.bf16 %v145_v19, %v145_v19 }
  0xf9   :  { %174 = vst.msk [vmem:[#allocation2 + $0x4] sm:$0xf] %vm172_vm2, %v889_v20 }
  0xfa LB: > { %v1156_v21 = vmov 0.0   ;;  %vm1157_vm3 = vmmov 0   ;;  %s892_s2 = sshll.u32 %s1148_s9, 3  ;;  %s1158_s11 = smov 96   ;;  %vm199_vm4 = vcmask 64512   ;;  %vm247_vm5 = vcmask 130048   ;;  %s1148_s9 = sphi %s1220_s9, %s186_s9  }
  0xfb   : > { %926 = vmatprep.subr.bf16.mxu0 %v1156_v21  ;;  %928 = vmatprep.mubr.msk.bf16.mxu0 %vm1157_vm3, %v1156_v21  ;;  %s189_s10 = scalar_lea.vmem [#allocation2], %s892_s2  ;;  %s1159_s12 = smov 64   ;;  %vm456_vm6 = vcmask 125952   ;;  %vm727_vm7 = vcmask 257152  }
  0xfc   : > { %932 = vmatprep.subr.bf16.mxu1 %v1156_v21  ;;  %934 = vmatprep.mubr.msk.bf16.mxu1 %vm1157_vm3, %v1156_v21  ;;  %s1160_s13 = smov 88   ;;  %s1161_s14 = smov 120  }
  0xfd   : > { %s1162_s15 = smov 72   ;;  %s1163_s16 = smov 80  }
  0xfe   : > { %s1164_s17 = smov 112   ;;  %s1165_s18 = smov 104  }
  0xff   : > { %s1166_s19 = smov 56   ;;  %s1167_s20 = smov 48  }
 0x100   : > { %v1234_v22 = vld [vmem:[%s189_s10] sm:$0xff]   ;;  %s1168_s21 = smov 40   ;;  %s1169_s22 = smov 8  }
 0x101   : > { %197 = vrot.lane.b32.xlu0 %v1234_v22, %s1158_s11  ;;  %269 = vrot.lane.b32.xlu1 %v1234_v22, %s1159_s12  ;;  %v1250_v34 = vld [vmem:[%s189_s10] sm:$0xff]   ;;  %s455_s23 = scalar_lea.vmem [#allocation3], %s892_s2  ;;  %s1170_s24 = smov 16  }
 0x102   : > { %s186_s9 = sadd.s32 1, %s1148_s9  }
 0x103   : > { %p183_p1 = scmp.ge.s32.totalorder %s186_s9, 2  }
 0x104   :  { %s1171_s27 = smov (%p183_p1), [#allocation10]  }
 0x105   : > { %321 = vrot.lane.b32.xlu1 %v1234_v22, %s1160_s13  ;;  %s831_s28 = sshll.u32 (%p183_p1), %s1171_s27, 4  ;;  %s832_s28 = int_to_ptr.vmem [resolvable:$true] %s831_s28 }
 0x106   :  { %p1121_p3 = scmp.lt.s32.totalorder (%p183_p1), %s832_s28, %s832_s28 }
 0x173   : > { %v198_v23 = vpop.permute.xlu0 %197  ;;  %v270_v25 = vpop.permute.xlu1 %269 }
 0x174   : > { %v204_v24 = vsel %vm199_vm4, %v198_v23, 0  ;;  %933 = vmatpush3.bf16.msra.mxu1 %v270_v25 }
 0x175   : > { %927 = vmatpush3.bf16.xpose.msra.mxu0 %v204_v24  ;;  %938 = vmatprep.subr.bf16.mxu1 %v1156_v21 }
 0x176   : > { %944 = vmatprep.subr.bf16.mxu0 %v1156_v21 }
 0x177   : > { %v322_v35 = vpop.permute.xlu1 %321 }
 0x178   : > { %v327_v46 = vsel %vm199_vm4, %v322_v35, 0 }
 0x17c   : > { %929 = vmatmul.mubr.msk.bf16.vlgmr.msra.gmra.mxu0 %vm199_vm4, %v1234_v22 }
 0x17d   : > { %946 = vmatprep.mubr.msk.bf16.mxu0 %vm1157_vm3, %v1156_v21 }
 0x23c   : > { %v240_v26 = vpop.f32.mrf.mxu0 }
 0x23d   : > { %v241_v27 = vadd.f32 %v240_v26, %v1215_v7 }
 0x23e   : > { %v930_v28 = vpop.f32.mrf.mxu0 }
 0x23f   : > { %v248_v29 = vsel %vm247_vm5, %v241_v27, -inf }
 0x240   : > { %249 = vmax.xlane.f32.xlu0 %v248_v29  ;;  %v243_v30 = vpop.f32.mrf.mxu0 }
 0x241   : > { %v244_v31 = vadd.f32 %v243_v30, %v1215_v7 }
 0x242   : > { %v931_v32 = vpop.f32.mrf.mxu0 }
 0x243   : > { %v251_v33 = vsel %vm247_vm5, %v244_v31, -inf }
 0x244   : > { %252 = vmax.xlane.f32.xlu1 %v251_v33 }
 0x255   : > { %319 = vrot.lane.b32.xlu1 %v1234_v22, %s1161_s14 }
 0x256   : > { %590 = vrot.lane.b32.xlu0 %v1250_v34, %s1162_s15 }
 0x259   : > { %468 = vrot.lane.b32.xlu1 %v1250_v34, %s1163_s16 }
 0x25d   : > { %466 = vrot.lane.b32.xlu1 %v1250_v34, %s1164_s17 }
 0x261   : > { %588 = vrot.lane.b32.xlu1 %v1250_v34, %s1165_s18 }
 0x2c9   : > { %v250_v36 = vpop.xlane.xlu0 %249 }
 0x2ca   : > { %v254_v37 = vsub.f32 %v241_v27, %v250_v36 }
 0x2cc   : > { %v256_v38 = vmul.f32 1.442695, %v254_v37 }
 0x2cd   : > { %v253_v39 = vpop.xlane.xlu1 %252  ;;  %v591_v49 = vpop.permute.xlu0 %590 }
 0x2ce   : > { %v255_v40 = vsub.f32 %v244_v31, %v253_v39  ;;  %1020 = vpow2.f32 %v256_v38  ;;  %v596_v51 = vsel %vm199_vm4, %v591_v49, 0 }
 0x2d0   : > { %v258_v41 = vmul.f32 1.442695, %v255_v40 }
 0x2d1   : > { %v320_v44 = vpop.permute.xlu1 %319 }
 0x2d2   : > { %1022 = vpow2.f32 %v258_v41 }
 0x2d5   : > { %v469_v47 = vpop.permute.xlu1 %468 }
 0x2d6   : > { %v474_v48 = vsel %vm199_vm4, %v469_v47, 0 }
 0x2d9   : > { %v467_v50 = vpop.permute.xlu1 %466 }
 0x2db   : > { %v1257_v42 = vpop.eup %1020 }
 0x2dd   : > { %v589_v52 = vpop.permute.xlu1 %588 }
 0x2df   : > { %v1259_v43 = vpop.eup %1022 }
 0x2e0   : > { %v268_v45 = vpack.c.bf16 %v1259_v43, %v1257_v42 }
 0x2e2   : > { %935 = vmatmul.mubr.msk.bf16.vlgmr.msra.gmra.mxu1 %vm247_vm5, %v268_v45 }
 0x2e3   : > { %939 = vmatpush3.bf16.xpose.msra.mxu1 %v327_v46  ;;  %940 = vmatprep.mubr.msk.bf16.mxu1 %vm1157_vm3, %v1156_v21 }
 0x2e4   : > { %950 = vmatprep.subr.bf16.mxu1 %v1156_v21 }
 0x2ea   : > { %941 = vmatmul.mubr.msk.bf16.vlgmr.msra.gmra.mxu1 %vm199_vm4, %v320_v44 }
 0x2eb   : > { %951 = vmatpush3.bf16.xpose.msra.mxu1 %v474_v48  ;;  %952 = vmatprep.mubr.msk.bf16.mxu1 %vm1157_vm3, %v1156_v21 }
 0x2ec   : > { %962 = vmatprep.subr.bf16.mxu1 %v1156_v21 }
 0x2f2   : > { %953 = vmatmul.mubr.msk.bf16.vlgmr.msra.gmra.mxu1 %vm199_vm4, %v467_v50 }
 0x2f3   : > { %963 = vmatpush3.bf16.xpose.msra.mxu1 %v596_v51  ;;  %964 = vmatprep.mubr.msk.bf16.mxu1 %vm1157_vm3, %v1156_v21 }
 0x2fa   : > { %965 = vmatmul.mubr.msk.bf16.vlgmr.msra.gmra.mxu1 %vm199_vm4, %v589_v52 }
 0x3a2   : > { %v1278_v53 = vpop.f32.mrf.mxu1 }
 0x3a4   : > { %v936_v54 = vpop.f32.mrf.mxu1 }
 0x3a6   : > { %v1280_v55 = vpop.f32.mrf.mxu1 }
 0x3a8   : > { %v937_v56 = vpop.f32.mrf.mxu1 }
 0x3aa   : > { %v363_v57 = vpop.f32.mrf.mxu1 }
 0x3ab   : > { %v364_v58 = vadd.f32 %v363_v57, %v1215_v7 }
 0x3ac   : > { %v942_v59 = vpop.f32.mrf.mxu1 }
 0x3ad   : > { %v370_v60 = vsel %vm247_vm5, %v364_v58, -inf  ;;  %v260_v59 = vsel %vm247_vm5, %v1257_v42, 0.0 }
 0x3ae   : > { %371 = vmax.xlane.f32.xlu1 %v370_v60  ;;  %v366_v61 = vpop.f32.mrf.mxu1  ;;  %v263_v60 = vsel %vm247_vm5, %v1259_v43, 0.0 }
 0x3af   : > { %v367_v62 = vadd.f32 %v366_v61, %v1215_v7 }
 0x3b0   : > { %v943_v63 = vpop.f32.mrf.mxu1 }
 0x3b1   : > { %v373_v0 = vsel %vm247_vm5, %v367_v62, -inf }
 0x3b2   : > { %374 = vmax.xlane.f32.xlu0 %v373_v0  ;;  %v510_v1 = vpop.f32.mrf.mxu1 }
 0x3b3   : > { %v511_v12 = vadd.f32 %v510_v1, %v1215_v7 }
 0x3b4   : > { %v954_v2 = vpop.f32.mrf.mxu1 }
 0x3b5   : > { %v517_v13 = vsel %vm247_vm5, %v511_v12, -inf }
 0x3b6   : > { %v513_v3 = vpop.f32.mrf.mxu1 }
 0x3b7   : > { %v514_v14 = vadd.f32 %v513_v3, %v1215_v7 }
 0x3b8   : > { %v955_v4 = vpop.f32.mrf.mxu1 }
 0x3b9   : > { %v520_v16 = vsel %vm247_vm5, %v514_v14, -inf }
 0x3ba   : > { %v632_v5 = vpop.f32.mrf.mxu1 }
 0x3bb   : > { %v633_v15 = vadd.f32 %v632_v5, %v1215_v7 }
 0x3bc   : > { %v966_v6 = vpop.f32.mrf.mxu1 }
 0x3bd   : > { %v639_v17 = vsel %vm247_vm5, %v633_v15, -inf }
 0x3be   : > { %v635_v8 = vpop.f32.mrf.mxu1 }
 0x3bf   : > { %v636_v9 = vadd.f32 %v635_v8, %v1215_v7  ;;  %391 = vrot.lane.b32.xlu1 %v1234_v22, %s1166_s19 }
 0x3c0   : > { %v967_v10 = vpop.f32.mrf.mxu1 }
 0x3c1   : > { %v642_v11 = vsel %vm247_vm5, %v636_v9, -inf }
 0x3c2   : > { %643 = vmax.xlane.f32.xlu0 %v642_v11 }
 0x3d8   : > { %538 = vrot.lane.b32.xlu0 %v1250_v34, %s1167_s20 }
 0x3e3   : > { %518 = vmax.xlane.f32.xlu1 %v517_v13 }
 0x3e7   : > { %521 = vmax.xlane.f32.xlu1 %v520_v16 }
 0x3eb   : > { %640 = vmax.xlane.f32.xlu1 %v639_v17 }
 0x3fc   : > { %660 = vrot.lane.b32.xlu1 %v1250_v34, %s1168_s21 }
 0x437   : > { %v372_v18 = vpop.xlane.xlu1 %371 }
 0x438   : > { %v376_v19 = vsub.f32 %v364_v58, %v372_v18 }
 0x43a   : > { %v378_v20 = vmul.f32 1.442695, %v376_v19 }
 0x43b   : > { %v375_v22 = vpop.xlane.xlu0 %374  ;;  %v392_v23 = vpop.permute.xlu1 %391 }
 0x43c   : > { %v377_v24 = vsub.f32 %v367_v62, %v375_v22  ;;  %945 = vmatpush3.bf16.msra.mxu0 %v392_v23  ;;  %1024 = vpow2.f32 %v378_v20 }
 0x43d   : > { %956 = vmatprep.subr.bf16.mxu0 %v1156_v21 }
 0x43e   : > { %v380_v25 = vmul.f32 1.442695, %v377_v24 }
 0x440   : > { %1026 = vpow2.f32 %v380_v25 }
 0x449   : > { %v1025_v27 = vpop.eup %1024 }
 0x44a   : > { %v382_v35 = vsel %vm247_vm5, %v1025_v27, 0.0 }
 0x44b   : > { %v644_v26 = vpop.xlane.xlu0 %643 }
 0x44c   : > { %v646_v28 = vsub.f32 %v636_v9, %v644_v26 }
 0x44d   : > { %v1027_v29 = vpop.eup %1026 }
 0x44e   : > { %v649_v30 = vmul.f32 1.442695, %v646_v28  ;;  %v390_v31 = vpack.c.bf16 %v1027_v29, %v1025_v27  ;;  %v385_v56 = vsel %vm247_vm5, %v1027_v29, 0.0 }
 0x44f   : > { %v539_v32 = vpop.permute.xlu0 %538 }
 0x450   : > { %1028 = vpow2.f32 %v649_v30  ;;  %947 = vmatmul.mubr.msk.bf16.vlgmr.msra.gmra.mxu0 %vm247_vm5, %v390_v31 }
 0x451   : > { %957 = vmatpush3.bf16.msra.mxu0 %v539_v32  ;;  %958 = vmatprep.mubr.msk.bf16.mxu0 %vm1157_vm3, %v1156_v21 }
 0x452   : > { %968 = vmatprep.subr.bf16.mxu0 %v1156_v21 }
 0x45d   : > { %v1029_v33 = vpop.eup %1028 }
 0x45e   : > { %v654_v34 = vsel %vm247_vm5, %v1029_v33, 0.0 }
 0x45f   : > { %655 = vadd.xlane.f32.xlu0 %v654_v34 }
 0x463   : > { %383 = vadd.xlane.f32.xlu0 %v382_v35 }
 0x46c   : > { %v519_v36 = vpop.xlane.xlu1 %518 }
 0x46d   : > { %v523_v37 = vsub.f32 %v511_v12, %v519_v36 }
 0x46f   : > { %v525_v38 = vmul.f32 1.442695, %v523_v37 }
 0x470   : > { %v522_v39 = vpop.xlane.xlu1 %521 }
 0x471   : > { %1030 = vpow2.f32 %v525_v38  ;;  %v524_v40 = vsub.f32 %v514_v14, %v522_v39 }
 0x473   : > { %v527_v41 = vmul.f32 1.442695, %v524_v40 }
 0x474   : > { %v641_v44 = vpop.xlane.xlu1 %640 }
 0x475   : > { %1032 = vpow2.f32 %v527_v41  ;;  %v645_v45 = vsub.f32 %v633_v15, %v641_v44 }
 0x477   : > { %v647_v46 = vmul.f32 1.442695, %v645_v45 }
 0x478   : > { %v661_v50 = vpop.permute.xlu1 %660 }
 0x479   : > { %1034 = vpow2.f32 %v647_v46  ;;  %v1052_v46 = vld [vmem:[#allocation9 + $0x8] sm:$0xff] (%p183_p1)  }
 0x47e   : > { %v1031_v47 = vpop.eup %1030 }
 0x47f   : > { %v529_v48 = vsel %vm247_vm5, %v1031_v47, 0.0 }
 0x480   : > { %530 = vadd.xlane.f32.xlu0 %v529_v48 }
 0x482   : > { %v1033_v49 = vpop.eup %1032 }
 0x483   : > { %v537_v51 = vpack.c.bf16 %v1033_v49, %v1031_v47  ;;  %v532_v58 = vsel %vm247_vm5, %v1033_v49, 0.0  ;;  %v1053_v47 = vld [vmem:[#allocation9] sm:$0xff] (%p183_p1)  }
 0x485   : > { %959 = vmatmul.mubr.msk.bf16.vlgmr.msra.gmra.mxu0 %vm247_vm5, %v537_v51 }
 0x486   : > { %v1035_v52 = vpop.eup %1034  ;;  %969 = vmatpush3.bf16.msra.mxu0 %v661_v50  ;;  %970 = vmatprep.mubr.msk.bf16.mxu0 %vm1157_vm3, %v1156_v21  ;;  %v881_v50 = vld [vmem:[%s1341_s4] ss:$0 sm:$0xff] (%p183_p1)  ;;  %s1116_s4 = scalar_lea.vmem (%p183_p1), %s832_s28, 512 }
 0x487   : > { %v651_v54 = vsel %vm247_vm5, %v1035_v52, 0.0  ;;  %v659_v57 = vpack.c.bf16 %v1029_v33, %v1035_v52  ;;  %974 = vmatprep.subr.bf16.mxu0 (%p183_p1), %v1052_v46  ;;  %p1117_p2 = scmp.ne.s32.totalorder (%p183_p1), %s832_s28, %s1116_s4  ;;  %p1122_p4 = scmp.lt.s32.totalorder (%p183_p1), %s1116_s4, %s1116_s4 }
 0x488   : > { %652 = vadd.xlane.f32.xlu1 %v651_v54 }
 0x489   :  { %p1123_p5 = por (%p183_p1), %p1122_p4, %p1121_p3 }
 0x48b   :  { %p1124_p6 = pnand (%p183_p1), %p1123_p5, %p1117_p2 }
 0x48c   : > { %386 = vadd.xlane.f32.xlu1 %v385_v56 }
 0x48d   : > { %971 = vmatmul.mubr.msk.bf16.vlgmr.msra.gmra.mxu0 %vm247_vm5, %v659_v57 }
 0x48e   :  { %975 = vmatpush3.bf16.msra.mxu0 (%p183_p1), %v1052_v46 }
 0x48f   :  { %976 = vmatprep.subr.bf16.mxu0 (%p183_p1), %v1053_v47 }
 0x490   : > { %533 = vadd.xlane.f32.xlu1 %v532_v58 }
 0x492   :  { %977 = vmatpush3.bf16.msra.mxu0 (%p183_p1), %v1053_v47 }
 0x494   : > { %261 = vadd.xlane.f32.xlu1 %v260_v59 }
 0x498   : > { %264 = vadd.xlane.f32.xlu1 %v263_v60 }
 0x4e8   : > { %v656_v21 = vpop.xlane.xlu0 %655 }
 0x4ec   : > { %v384_v63 = vpop.xlane.xlu0 %383 }
 0x4ed   : > { %1036 = vrcp.f32 %v384_v63 }
 0x4fa   : > { %v1037_v4 = vpop.eup %1036 }
 0x509   : > { %v531_v9 = vpop.xlane.xlu0 %530 }
 0x510   : > { %v431_v61 = vpop.f32.mrf.mxu0 }
 0x511   : > { %v653_v62 = vpop.xlane.xlu1 %652  ;;  %v438_v6 = vmul.f32 %v1037_v4, %v431_v61 }
 0x512   : > { %v948_v0 = vpop.f32.mrf.mxu0 }
 0x514   : > { %v434_v1 = vpop.f32.mrf.mxu0 }
 0x515   : > { %v387_v2 = vpop.xlane.xlu1 %386 }
 0x516   : > { %1038 = vrcp.f32 %v387_v2  ;;  %v949_v3 = vpop.f32.mrf.mxu0 }
 0x517   : > { %1040 = vrcp.f32 %v531_v9 }
 0x519   : > { %v534_v43 = vpop.xlane.xlu1 %533 }
 0x51a   : > { %1042 = vrcp.f32 %v534_v43 }
 0x51b   : > { %1044 = vrcp.f32 %v656_v21 }
 0x51c   : > { %1046 = vrcp.f32 %v653_v62 }
 0x51d   : > { %v262_v29 = vpop.xlane.xlu1 %261 }
 0x521   : > { %v265_v30 = vpop.xlane.xlu1 %264 }
 0x522   : > { %1048 = vrcp.f32 %v265_v30 }
 0x523   : > { %v1039_v5 = vpop.eup %1038  ;;  %1050 = vrcp.f32 %v262_v29 }
 0x524   : > { %v439_v8 = vmul.f32 %v1039_v5, %v434_v1  ;;  %v1041_v12 = vpop.eup %1040 }
 0x526   : > { %v440_v42 = vpack.c.bf16 %v439_v8, %v438_v6 }
 0x527   : > { %v1043_v13 = vpop.eup %1042 }
 0x528   : > { %442 = vrot.lane.b32.xlu1 %v440_v42, %s1169_s22  ;;  %v1045_v22 = vpop.eup %1044 }
 0x529   : > { %v1047_v23 = vpop.eup %1046 }
 0x52f   : > { %v1049_v31 = vpop.eup %1048 }
 0x530   : > { %v1051_v32 = vpop.eup %1050  ;;  %v317_v33 = vmul.f32 %v1049_v31, %v1280_v55 }
 0x531   : > { %v316_v34 = vmul.f32 %v1051_v32, %v1278_v53 }
 0x533   : > { %v318_v35 = vpack.c.bf16 %v317_v33, %v316_v34 }
 0x545   : > { %v578_v10 = vpop.f32.mrf.mxu0 }
 0x546   : > { %v585_v15 = vmul.f32 %v1041_v12, %v578_v10 }
 0x547   : > { %v960_v11 = vpop.f32.mrf.mxu0 }
 0x549   : > { %v581_v14 = vpop.f32.mrf.mxu0 }
 0x54a   : > { %v586_v16 = vmul.f32 %v1043_v13, %v581_v14 }
 0x54b   : > { %v961_v17 = vpop.f32.mrf.mxu0 }
 0x54c   : > { %v587_v18 = vpack.c.bf16 %v586_v16, %v585_v15 }
 0x54d   : > { %v700_v19 = vpop.f32.mrf.mxu0 }
 0x54e   : > { %v707_v25 = vmul.f32 %v1047_v23, %v700_v19 }
 0x54f   : > { %v972_v20 = vpop.f32.mrf.mxu0 }
 0x551   : > { %v703_v24 = vpop.f32.mrf.mxu0 }
 0x552   : > { %v708_v26 = vmul.f32 %v1045_v22, %v703_v24 }
 0x553   : > { %v973_v27 = vpop.f32.mrf.mxu0 }
 0x554   : > { %v709_v28 = vpack.c.bf16 %v708_v26, %v707_v25 }
 0x556   : > { %711 = vrot.lane.b32.xlu0 %v709_v28, %s1169_s22 }
 0x59a   : > { %v443_v36 = vpop.permute.xlu1 %442 }
 0x59b   : > { %v446_v37 = vsel %vm199_vm4, %v318_v35, %v443_v36 }
 0x59c   : > { %v871_v38 = vcombine.low %v446_v37, %v446_v37  ;;  %v872_v39 = vcombine.high %v446_v37, %v446_v37 }
 0x59e   : > { %457 = vst.msk [vmem:[%s455_s23] sm:$0xf] %vm456_vm6, %v871_v38  ;;  %458 = vst.msk [vmem:[%s455_s23 + $0x4] sm:$0xf] %vm456_vm6, %v872_v39 }
 0x5c8   : > { %v712_v40 = vpop.permute.xlu0 %711 }
 0x5c9   : > { %v715_v41 = vsel %vm199_vm4, %v587_v18, %v712_v40 }
 0x5ca   : > { %v879_v44 = vcombine.low %v715_v41, %v715_v41  ;;  %v880_v55 = vcombine.high %v715_v41, %v715_v41 }
 0x5cc   : > { %721 = vrot.lane.b32.xlu0 %v879_v44, %s1170_s24 }
 0x5d0   : > { %723 = vrot.lane.b32.xlu0 %v880_v55, %s1170_s24 }
 0x63e   : > { %v722_v53 = vpop.permute.xlu0 %721 }
 0x63f   : > { %728 = vst.msk [vmem:[%s455_s23] sm:$0xf] %vm727_vm7, %v722_v53  ;;  %185 = sbr.rel (!%p183_p1) target bundleno = 250 (0xfa), region = 61 }
 0x642   : > { %v724_v45 = vpop.permute.xlu0 %723 }
 0x643   : > { %729 = vst.msk [vmem:[%s455_s23 + $0x4] sm:$0xf] %vm727_vm7, %v724_v45 }
 0x64a   :  { %v1054_v48 = vld [vmem:[#allocation3] sm:$0xff]   ;;  %v1055_v49 = vld [vmem:[#allocation3 + $0x8] sm:$0xff]  }
 0x64b   :  { %978 = vmatprep.mubr.msk.bf16.mxu0 %vm100_vm0, %v1054_v48 }
 0x64c   :  { %979 = vmatmul.mubr.msk.bf16.vlgmr.msra.gmra.mxu0 %vm100_vm0, %v1055_v49 }
 0x70c   :  { %v980_v51 = vpop.f32.mrf.mxu0 }
 0x70d   :  { %v816_v52 = vadd.f32 %v980_v51, %v881_v50 }
 0x70e   :  { %v807_v54 = vpop.f32.mrf.mxu0 }
 0x70f   :  { %824 = vst.msk [vmem:[#allocation10 + $0x10] sm:$0xff] %vm100_vm0, %v816_v52  ;;  %v808_v7 = vadd.f32 %v881_v50, %v807_v54 }
 0x710   :  { %v981_v56 = vpop.f32.mrf.mxu0 }
 0x711   :  { %822 = vst.msk [vmem:[#allocation10] sm:$0xff] %vm100_vm0, %v808_v7  ;;  %v819_v57 = vadd.f32 %v981_v56, %v881_v50 }
 0x712   :  { %v810_v58 = vpop.f32.mrf.mxu0 }
 0x713   :  { %825 = vst.msk [vmem:[#allocation10 + $0x18] sm:$0xff] %vm100_vm0, %v819_v57  ;;  %v811_v59 = vadd.f32 %v881_v50, %v810_v58 }
 0x715   :  { %823 = vst.msk [vmem:[#allocation10 + $0x8] sm:$0xff] %vm100_vm0, %v811_v59 }
 0x716   :  { %1127 = shalt.err (!%p1124_p6)
}
 0x717   :  { %s1172_s29 = smov 128   ;;  %s1173_s30 = smov 8  }
 0x718   :  { %837 = dma.vmem_to_hbm [thread:$0]  %s832_s28, 512, %s1342_s5, [#allocation6], %s1172_s29, %s1172_s29, %s1173_s30  }
 0x719   :  { %1144 = dma.done.wait [#allocation6], 512  }
 0x71a   :  { %1145 = vsyncadd [#allocation6], 4294966784 }
 0x71b   :  { %841 = vsyncpa [#allocation5], 1 }
 0x71c   :  { %842 = vsyncpa [#allocation8], 1 }
 0x71d   :  { %843 = vsyncpa [#allocation6], 1 }

// kernel: tpu_custom_call.1
= control target key start
LH: loop header
LB: loop body
LE: loop exit
PB: predicated region body
PF: predicated region fallthrough
CT: control target
= control target key end

     0   :  { %10 = vsyncpa [#allocation5], 0  ;;  %s1337_s0 = inlined_call_operand.hbm [shape: bf16[2,16,32], index: 0, kind: input, shape index: {}]   ;;  %s1338_s1 = inlined_call_operand.hbm [shape: bf16[32,96], index: 1, kind: input, shape index: {}]   ;;  %s1339_s2 = inlined_call_operand.vmem [shape: f32[1,96], index: 2, kind: input, shape index: {}]   ;;  %s1340_s3 = inlined_call_operand.hbm [shape: bf16[32,32], index: 3, kind: input, shape index: {}]   ;;  %s1341_s4 = inlined_call_operand.vmem [shape: f32[1,32], index: 4, kind: input, shape index: {}]   ;;  %s1342_s5 = inlined_call_operand.hbm [shape: f32[2,16,32], index: 5, kind: output, shape index: {}]  }
   0x1   :  { %11 = vsyncpa [#allocation8], 0 }
   0x2   :  { %12 = vsyncpa [#allocation6], 0  ;;  %s1150_s18 = smov [#allocation7]   ;;  %s1151_s20 = smov [#allocation4]  }
   0x3   :  { %s30_s19 = sshll.u32 %s1150_s18, 4  ;;  %s18_s21 = sshll.u32 %s1151_s20, 4  ;;  %s31_s19 = int_to_ptr.vmem [resolvable:$true] %s30_s19  ;;  %s19_s21 = int_to_ptr.vmem [resolvable:$true] %s18_s21 }
   0x4   :  { %s1064_s22 = scalar_lea.vmem %s31_s19, 256  ;;  %p1069_p1 = scmp.lt.s32.totalorder %s31_s19, %s31_s19 }
   0x5   :  { %p1065_p0 = scmp.ne.s32.totalorder %s31_s19, %s1064_s22  ;;  %p1070_p2 = scmp.lt.s32.totalorder %s1064_s22, %s1064_s22 }
   0x7   :  { %p1071_p3 = por %p1070_p2, %p1069_p1 }
   0x9   :  { %p1072_p4 = pnand %p1071_p3, %p1065_p0 }
   0xb   :  { %1075 = shalt.err (!%p1072_p4)
}
   0xc   :  { %s1152_s23 = smov 64   ;;  %s1153_s24 = smov 4  }
   0xd   :  { %36 = dma.hbm_to_vmem [thread:$0]  %s1338_s1, 256, %s31_s19, [#allocation8], %s1152_s23, %s1152_s23, %s1153_s24  }
   0xe   :  { %s1084_s27 = scalar_lea.vmem %s19_s21, 256  ;;  %p1089_p6 = scmp.lt.s32.totalorder %s19_s21, %s19_s21 }
   0xf   :  { %p1085_p5 = scmp.ne.s32.totalorder %s19_s21, %s1084_s27  ;;  %p1090_p7 = scmp.lt.s32.totalorder %s1084_s27, %s1084_s27 }
  0x11   :  { %p1091_p8 = por %p1090_p7, %p1089_p6 }
  0x13   :  { %p1092_p9 = pnand %p1091_p8, %p1085_p5 }
  0x15   :  { %1095 = shalt.err (!%p1092_p9)
}
  0x16   :  { %24 = dma.hbm_to_vmem [thread:$0]  %s1337_s0, 256, %s19_s21, [#allocation5], %s1152_s23, %s1152_s23, %s1153_s24  }
  0x17   :  { %s1154_s30 = smov [#allocation9]  }
  0x18   :  { %s44_s6 = sshll.u32 %s1154_s30, 4  ;;  %s45_s6 = int_to_ptr.vmem [resolvable:$true] %s44_s6 }
  0x19   :  { %s1104_s7 = scalar_lea.vmem %s45_s6, 256  ;;  %p1109_p11 = scmp.lt.s32.totalorder %s45_s6, %s45_s6 }
  0x1a   :  { %p1105_p10 = scmp.ne.s32.totalorder %s45_s6, %s1104_s7  ;;  %p1110_p12 = scmp.lt.s32.totalorder %s1104_s7, %s1104_s7 }
  0x1c   :  { %p1111_p13 = por %p1110_p12, %p1109_p11 }
  0x1e   :  { %p1112_p0 = pnand %p1111_p13, %p1105_p10 }
  0x20   :  { %1115 = shalt.err (!%p1112_p0)
}
  0x21   :  { %50 = dma.hbm_to_vmem [thread:$0]  %s1340_s3, 256, %s45_s6, [#allocation8], %s1152_s23, %s1152_s23, %s1153_s24  }
  0x22   :  { %1140 = dma.done.wait [#allocation5], 256  }
  0x23   :  { %1141 = vsyncadd [#allocation5], 4294967040 }
  0x24   :  { %1142 = dma.done.wait [#allocation8], 512  }
  0x25   :  { %1143 = vsyncadd [#allocation8], 4294966784  ;;  %v1014_v0 = vld [vmem:[#allocation7 + $0x8] sm:$0xff]   ;;  %v1015_v1 = vld [vmem:[#allocation7] sm:$0xff]   ;;  %vm100_vm0 = vcmask 261120   ;;  %v177_v4 = vlaneseq  ;;  %vm172_vm2 = vcmask 781312  }
  0x26   :  { %918 = vmatprep.subr.bf16.mxu0 %v1014_v0  ;;  %v1016_v2 = vld [vmem:[#allocation4] sm:$0xff]   ;;  %v1017_v3 = vld [vmem:[#allocation4 + $0x8] sm:$0xff]   ;;  %v1155_v6 = vmov -1e+30   ;;  %s1220_s9 = smov 0  }
  0x27   :  { %919 = vmatpush3.bf16.msra.mxu0 %v1014_v0  ;;  %922 = vmatprep.mubr.msk.bf16.mxu0 %vm100_vm0, %v1016_v2  ;;  %v178_v5 = vand.u32 127, %v177_v4  ;;  %v853_v8 = vld [vmem:[%s1339_s2] ss:$0 sm:$0xff] }
  0x28   :  { %920 = vmatprep.subr.bf16.mxu0 %v1015_v1 }
  0x29   :  { %vm179_vm1 = vcmp.lt.s32.totalorder %v178_v5, 8 }
  0x2a   :  { %v1215_v7 = vsel %vm179_vm1, 0.0, %v1155_v6 }
  0x2b   :  { %921 = vmatpush3.bf16.msra.mxu0 %v1015_v1 }
  0x2e   :  { %923 = vmatmul.mubr.msk.bf16.vlgmr.msra.gmra.mxu0 %vm100_vm0, %v1017_v3 }
  0xee   :  { %v924_v9 = vpop.f32.mrf.mxu0 }
  0xef   :  { %v150_v10 = vadd.f32 %v924_v9, %v853_v8 }
  0xf0   :  { %v141_v11 = vpop.f32.mrf.mxu0 }
  0xf1   :  { %v890_v12 = vpack.c.bf16 %v150_v10, %v150_v10  ;;  %v142_v13 = vadd.f32 %v853_v8, %v141_v11 }
  0xf2   :  { %v925_v14 = vpop.f32.mrf.mxu0 }
  0xf3   :  { %175 = vst.msk [vmem:[#allocation2 + $0x8] sm:$0xf] %vm172_vm2, %v890_v12  ;;  %v888_v15 = vpack.c.bf16 %v142_v13, %v142_v13  ;;  %v153_v16 = vadd.f32 %v925_v14, %v853_v8 }
  0xf4   :  { %v144_v17 = vpop.f32.mrf.mxu0 }
  0xf5   :  { %173 = vst.msk [vmem:[#allocation2] sm:$0xf] %vm172_vm2, %v888_v15  ;;  %v891_v18 = vpack.c.bf16 %v153_v16, %v153_v16  ;;  %v145_v19 = vadd.f32 %v853_v8, %v144_v17 }
  0xf7   :  { %176 = vst.msk [vmem:[#allocation2 + $0xc] sm:$0xf] %vm172_vm2, %v891_v18  ;;  %v889_v20 = vpack.c.bf16 %v145_v19, %v145_v19 }
  0xf9   :  { %174 = vst.msk [vmem:[#allocation2 + $0x4] sm:$0xf] %vm172_vm2, %v889_v20 }
  0xfa LB: > { %v1156_v21 = vmov 0.0   ;;  %vm1157_vm3 = vmmov 0   ;;  %s892_s2 = sshll.u32 %s1148_s9, 3  ;;  %s1158_s11 = smov 96   ;;  %vm199_vm4 = vcmask 64512   ;;  %vm247_vm5 = vcmask 130048   ;;  %s1148_s9 = sphi %s1220_s9, %s186_s9  }
  0xfb   : > { %926 = vmatprep.subr.bf16.mxu0 %v1156_v21  ;;  %928 = vmatprep.mubr.msk.bf16.mxu0 %vm1157_vm3, %v1156_v21  ;;  %s189_s10 = scalar_lea.vmem [#allocation2], %s892_s2  ;;  %s1159_s12 = smov 64   ;;  %vm456_vm6 = vcmask 125952   ;;  %vm727_vm7 = vcmask 257152  }
  0xfc   : > { %932 = vmatprep.subr.bf16.mxu1 %v1156_v21  ;;  %934 = vmatprep.mubr.msk.bf16.mxu1 %vm1157_vm3, %v1156_v21  ;;  %s1160_s13 = smov 88   ;;  %s1161_s14 = smov 120  }
  0xfd   : > { %s1162_s15 = smov 72   ;;  %s1163_s16 = smov 80  }
  0xfe   : > { %s1164_s17 = smov 112   ;;  %s1165_s18 = smov 104  }
  0xff   : > { %s1166_s19 = smov 56   ;;  %s1167_s20 = smov 48  }
 0x100   : > { %v1234_v22 = vld [vmem:[%s189_s10] sm:$0xff]   ;;  %s1168_s21 = smov 40   ;;  %s1169_s22 = smov 8  }
 0x101   : > { %197 = vrot.lane.b32.xlu0 %v1234_v22, %s1158_s11  ;;  %269 = vrot.lane.b32.xlu1 %v1234_v22, %s1159_s12  ;;  %v1250_v34 = vld [vmem:[%s189_s10] sm:$0xff]   ;;  %s455_s23 = scalar_lea.vmem [#allocation3], %s892_s2  ;;  %s1170_s24 = smov 16  }
 0x102   : > { %s186_s9 = sadd.s32 1, %s1148_s9  }
 0x103   : > { %p183_p1 = scmp.ge.s32.totalorder %s186_s9, 2  }
 0x104   :  { %s1171_s27 = smov (%p183_p1), [#allocation10]  }
 0x105   : > { %321 = vrot.lane.b32.xlu1 %v1234_v22, %s1160_s13  ;;  %s831_s28 = sshll.u32 (%p183_p1), %s1171_s27, 4  ;;  %s832_s28 = int_to_ptr.vmem [resolvable:$true] %s831_s28 }
 0x106   :  { %p1121_p3 = scmp.lt.s32.totalorder (%p183_p1), %s832_s28, %s832_s28 }
 0x173   : > { %v198_v23 = vpop.permute.xlu0 %197  ;;  %v270_v25 = vpop.permute.xlu1 %269 }
 0x174   : > { %v204_v24 = vsel %vm199_vm4, %v198_v23, 0  ;;  %933 = vmatpush3.bf16.msra.mxu1 %v270_v25 }
 0x175   : > { %927 = vmatpush3.bf16.xpose.msra.mxu0 %v204_v24  ;;  %938 = vmatprep.subr.bf16.mxu1 %v1156_v21 }
 0x176   : > { %944 = vmatprep.subr.bf16.mxu0 %v1156_v21 }
 0x177   : > { %v322_v35 = vpop.permute.xlu1 %321 }
 0x178   : > { %v327_v46 = vsel %vm199_vm4, %v322_v35, 0 }
 0x17c   : > { %929 = vmatmul.mubr.msk.bf16.vlgmr.msra.gmra.mxu0 %vm199_vm4, %v1234_v22 }
 0x17d   : > { %946 = vmatprep.mubr.msk.bf16.mxu0 %vm1157_vm3, %v1156_v21 }
 0x23c   : > { %v240_v26 = vpop.f32.mrf.mxu0 }
 0x23d   : > { %v241_v27 = vadd.f32 %v240_v26, %v1215_v7 }
 0x23e   : > { %v930_v28 = vpop.f32.mrf.mxu0 }
 0x23f   : > { %v248_v29 = vsel %vm247_vm5, %v241_v27, -inf }
 0x240   : > { %249 = vmax.xlane.f32.xlu0 %v248_v29  ;;  %v243_v30 = vpop.f32.mrf.mxu0 }
 0x241   : > { %v244_v31 = vadd.f32 %v243_v30, %v1215_v7 }
 0x242   : > { %v931_v32 = vpop.f32.mrf.mxu0 }
 0x243   : > { %v251_v33 = vsel %vm247_vm5, %v244_v31, -inf }
 0x244   : > { %252 = vmax.xlane.f32.xlu1 %v251_v33 }
 0x255   : > { %319 = vrot.lane.b32.xlu1 %v1234_v22, %s1161_s14 }
 0x256   : > { %590 = vrot.lane.b32.xlu0 %v1250_v34, %s1162_s15 }
 0x259   : > { %468 = vrot.lane.b32.xlu1 %v1250_v34, %s1163_s16 }
 0x25d   : > { %466 = vrot.lane.b32.xlu1 %v1250_v34, %s1164_s17 }
 0x261   : > { %588 = vrot.lane.b32.xlu1 %v1250_v34, %s1165_s18 }
 0x2c9   : > { %v250_v36 = vpop.xlane.xlu0 %249 }
 0x2ca   : > { %v254_v37 = vsub.f32 %v241_v27, %v250_v36 }
 0x2cc   : > { %v256_v38 = vmul.f32 1.442695, %v254_v37 }
 0x2cd   : > { %v253_v39 = vpop.xlane.xlu1 %252  ;;  %v591_v49 = vpop.permute.xlu0 %590 }
 0x2ce   : > { %v255_v40 = vsub.f32 %v244_v31, %v253_v39  ;;  %1020 = vpow2.f32 %v256_v38  ;;  %v596_v51 = vsel %vm199_vm4, %v591_v49, 0 }
 0x2d0   : > { %v258_v41 = vmul.f32 1.442695, %v255_v40 }
 0x2d1   : > { %v320_v44 = vpop.permute.xlu1 %319 }
 0x2d2   : > { %1022 = vpow2.f32 %v258_v41 }
 0x2d5   : > { %v469_v47 = vpop.permute.xlu1 %468 }
 0x2d6   : > { %v474_v48 = vsel %vm199_vm4, %v469_v47, 0 }
 0x2d9   : > { %v467_v50 = vpop.permute.xlu1 %466 }
 0x2db   : > { %v1257_v42 = vpop.eup %1020 }
 0x2dd   : > { %v589_v52 = vpop.permute.xlu1 %588 }
 0x2df   : > { %v1259_v43 = vpop.eup %1022 }
 0x2e0   : > { %v268_v45 = vpack.c.bf16 %v1259_v43, %v1257_v42 }
 0x2e2   : > { %935 = vmatmul.mubr.msk.bf16.vlgmr.msra.gmra.mxu1 %vm247_vm5, %v268_v45 }
 0x2e3   : > { %939 = vmatpush3.bf16.xpose.msra.mxu1 %v327_v46  ;;  %940 = vmatprep.mubr.msk.bf16.mxu1 %vm1157_vm3, %v1156_v21 }
 0x2e4   : > { %950 = vmatprep.subr.bf16.mxu1 %v1156_v21 }
 0x2ea   : > { %941 = vmatmul.mubr.msk.bf16.vlgmr.msra.gmra.mxu1 %vm199_vm4, %v320_v44 }
 0x2eb   : > { %951 = vmatpush3.bf16.xpose.msra.mxu1 %v474_v48  ;;  %952 = vmatprep.mubr.msk.bf16.mxu1 %vm1157_vm3, %v1156_v21 }
 0x2ec   : > { %962 = vmatprep.subr.bf16.mxu1 %v1156_v21 }
 0x2f2   : > { %953 = vmatmul.mubr.msk.bf16.vlgmr.msra.gmra.mxu1 %vm199_vm4, %v467_v50 }
 0x2f3   : > { %963 = vmatpush3.bf16.xpose.msra.mxu1 %v596_v51  ;;  %964 = vmatprep.mubr.msk.bf16.mxu1 %vm1157_vm3, %v1156_v21 }
 0x2fa   : > { %965 = vmatmul.mubr.msk.bf16.vlgmr.msra.gmra.mxu1 %vm199_vm4, %v589_v52 }
 0x3a2   : > { %v1278_v53 = vpop.f32.mrf.mxu1 }
 0x3a4   : > { %v936_v54 = vpop.f32.mrf.mxu1 }
 0x3a6   : > { %v1280_v55 = vpop.f32.mrf.mxu1 }
 0x3a8   : > { %v937_v56 = vpop.f32.mrf.mxu1 }
 0x3aa   : > { %v363_v57 = vpop.f32.mrf.mxu1 }
 0x3ab   : > { %v364_v58 = vadd.f32 %v363_v57, %v1215_v7 }
 0x3ac   : > { %v942_v59 = vpop.f32.mrf.mxu1 }
 0x3ad   : > { %v370_v60 = vsel %vm247_vm5, %v364_v58, -inf  ;;  %v260_v59 = vsel %vm247_vm5, %v1257_v42, 0.0 }
 0x3ae   : > { %371 = vmax.xlane.f32.xlu1 %v370_v60  ;;  %v366_v61 = vpop.f32.mrf.mxu1  ;;  %v263_v60 = vsel %vm247_vm5, %v1259_v43, 0.0 }
 0x3af   : > { %v367_v62 = vadd.f32 %v366_v61, %v1215_v7 }
 0x3b0   : > { %v943_v63 = vpop.f32.mrf.mxu1 }
 0x3b1   : > { %v373_v0 = vsel %vm247_vm5, %v367_v62, -inf }
 0x3b2   : > { %374 = vmax.xlane.f32.xlu0 %v373_v0  ;;  %v510_v1 = vpop.f32.mrf.mxu1 }
 0x3b3   : > { %v511_v12 = vadd.f32 %v510_v1, %v1215_v7 }
 0x3b4   : > { %v954_v2 = vpop.f32.mrf.mxu1 }
 0x3b5   : > { %v517_v13 = vsel %vm247_vm5, %v511_v12, -inf }
 0x3b6   : > { %v513_v3 = vpop.f32.mrf.mxu1 }
 0x3b7   : > { %v514_v14 = vadd.f32 %v513_v3, %v1215_v7 }
 0x3b8   : > { %v955_v4 = vpop.f32.mrf.mxu1 }
 0x3b9   : > { %v520_v16 = vsel %vm247_vm5, %v514_v14, -inf }
 0x3ba   : > { %v632_v5 = vpop.f32.mrf.mxu1 }
 0x3bb   : > { %v633_v15 = vadd.f32 %v632_v5, %v1215_v7 }
 0x3bc   : > { %v966_v6 = vpop.f32.mrf.mxu1 }
 0x3bd   : > { %v639_v17 = vsel %vm247_vm5, %v633_v15, -inf }
 0x3be   : > { %v635_v8 = vpop.f32.mrf.mxu1 }
 0x3bf   : > { %v636_v9 = vadd.f32 %v635_v8, %v1215_v7  ;;  %391 = vrot.lane.b32.xlu1 %v1234_v22, %s1166_s19 }
 0x3c0   : > { %v967_v10 = vpop.f32.mrf.mxu1 }
 0x3c1   : > { %v642_v11 = vsel %vm247_vm5, %v636_v9, -inf }
 0x3c2   : > { %643 = vmax.xlane.f32.xlu0 %v642_v11 }
 0x3d8   : > { %538 = vrot.lane.b32.xlu0 %v1250_v34, %s1167_s20 }
 0x3e3   : > { %518 = vmax.xlane.f32.xlu1 %v517_v13 }
 0x3e7   : > { %521 = vmax.xlane.f32.xlu1 %v520_v16 }
 0x3eb   : > { %640 = vmax.xlane.f32.xlu1 %v639_v17 }
 0x3fc   : > { %660 = vrot.lane.b32.xlu1 %v1250_v34, %s1168_s21 }
 0x437   : > { %v372_v18 = vpop.xlane.xlu1 %371 }
 0x438   : > { %v376_v19 = vsub.f32 %v364_v58, %v372_v18 }
 0x43a   : > { %v378_v20 = vmul.f32 1.442695, %v376_v19 }
 0x43b   : > { %v375_v22 = vpop.xlane.xlu0 %374  ;;  %v392_v23 = vpop.permute.xlu1 %391 }
 0x43c   : > { %v377_v24 = vsub.f32 %v367_v62, %v375_v22  ;;  %945 = vmatpush3.bf16.msra.mxu0 %v392_v23  ;;  %1024 = vpow2.f32 %v378_v20 }
 0x43d   : > { %956 = vmatprep.subr.bf16.mxu0 %v1156_v21 }
 0x43e   : > { %v380_v25 = vmul.f32 1.442695, %v377_v24 }
 0x440   : > { %1026 = vpow2.f32 %v380_v25 }
 0x449   : > { %v1025_v27 = vpop.eup %1024 }
 0x44a   : > { %v382_v35 = vsel %vm247_vm5, %v1025_v27, 0.0 }
 0x44b   : > { %v644_v26 = vpop.xlane.xlu0 %643 }
 0x44c   : > { %v646_v28 = vsub.f32 %v636_v9, %v644_v26 }
 0x44d   : > { %v1027_v29 = vpop.eup %1026 }
 0x44e   : > { %v649_v30 = vmul.f32 1.442695, %v646_v28  ;;  %v390_v31 = vpack.c.bf16 %v1027_v29, %v1025_v27  ;;  %v385_v56 = vsel %vm247_vm5, %v1027_v29, 0.0 }
 0x44f   : > { %v539_v32 = vpop.permute.xlu0 %538 }
 0x450   : > { %1028 = vpow2.f32 %v649_v30  ;;  %947 = vmatmul.mubr.msk.bf16.vlgmr.msra.gmra.mxu0 %vm247_vm5, %v390_v31 }
 0x451   : > { %957 = vmatpush3.bf16.msra.mxu0 %v539_v32  ;;  %958 = vmatprep.mubr.msk.bf16.mxu0 %vm1157_vm3, %v1156_v21 }
 0x452   : > { %968 = vmatprep.subr.bf16.mxu0 %v1156_v21 }
 0x45d   : > { %v1029_v33 = vpop.eup %1028 }
 0x45e   : > { %v654_v34 = vsel %vm247_vm5, %v1029_v33, 0.0 }
 0x45f   : > { %655 = vadd.xlane.f32.xlu0 %v654_v34 }
 0x463   : > { %383 = vadd.xlane.f32.xlu0 %v382_v35 }
 0x46c   : > { %v519_v36 = vpop.xlane.xlu1 %518 }
 0x46d   : > { %v523_v37 = vsub.f32 %v511_v12, %v519_v36 }
 0x46f   : > { %v525_v38 = vmul.f32 1.442695, %v523_v37 }
 0x470   : > { %v522_v39 = vpop.xlane.xlu1 %521 }
 0x471   : > { %1030 = vpow2.f32 %v525_v38  ;;  %v524_v40 = vsub.f32 %v514_v14, %v522_v39 }
 0x473   : > { %v527_v41 = vmul.f32 1.442695, %v524_v40 }
 0x474   : > { %v641_v44 = vpop.xlane.xlu1 %640 }
 0x475   : > { %1032 = vpow2.f32 %v527_v41  ;;  %v645_v45 = vsub.f32 %v633_v15, %v641_v44 }
 0x477   : > { %v647_v46 = vmul.f32 1.442695, %v645_v45 }
 0x478   : > { %v661_v50 = vpop.permute.xlu1 %660 }
 0x479   : > { %1034 = vpow2.f32 %v647_v46  ;;  %v1052_v46 = vld [vmem:[#allocation9 + $0x8] sm:$0xff] (%p183_p1)  }
 0x47e   : > { %v1031_v47 = vpop.eup %1030 }
 0x47f   : > { %v529_v48 = vsel %vm247_vm5, %v1031_v47, 0.0 }
 0x480   : > { %530 = vadd.xlane.f32.xlu0 %v529_v48 }
 0x482   : > { %v1033_v49 = vpop.eup %1032 }
 0x483   : > { %v537_v51 = vpack.c.bf16 %v1033_v49, %v1031_v47  ;;  %v532_v58 = vsel %vm247_vm5, %v1033_v49, 0.0  ;;  %v1053_v47 = vld [vmem:[#allocation9] sm:$0xff] (%p183_p1)  }
 0x485   : > { %959 = vmatmul.mubr.msk.bf16.vlgmr.msra.gmra.mxu0 %vm247_vm5, %v537_v51 }
 0x486   : > { %v1035_v52 = vpop.eup %1034  ;;  %969 = vmatpush3.bf16.msra.mxu0 %v661_v50  ;;  %970 = vmatprep.mubr.msk.bf16.mxu0 %vm1157_vm3, %v1156_v21  ;;  %v881_v50 = vld [vmem:[%s1341_s4] ss:$0 sm:$0xff] (%p183_p1)  ;;  %s1116_s4 = scalar_lea.vmem (%p183_p1), %s832_s28, 512 }
 0x487   : > { %v651_v54 = vsel %vm247_vm5, %v1035_v52, 0.0  ;;  %v659_v57 = vpack.c.bf16 %v1029_v33, %v1035_v52  ;;  %974 = vmatprep.subr.bf16.mxu0 (%p183_p1), %v1052_v46  ;;  %p1117_p2 = scmp.ne.s32.totalorder (%p183_p1), %s832_s28, %s1116_s4  ;;  %p1122_p4 = scmp.lt.s32.totalorder (%p183_p1), %s1116_s4, %s1116_s4 }
 0x488   : > { %652 = vadd.xlane.f32.xlu1 %v651_v54 }
 0x489   :  { %p1123_p5 = por (%p183_p1), %p1122_p4, %p1121_p3 }
 0x48b   :  { %p1124_p6 = pnand (%p183_p1), %p1123_p5, %p1117_p2 }
 0x48c   : > { %386 = vadd.xlane.f32.xlu1 %v385_v56 }
 0x48d   : > { %971 = vmatmul.mubr.msk.bf16.vlgmr.msra.gmra.mxu0 %vm247_vm5, %v659_v57 }
 0x48e   :  { %975 = vmatpush3.bf16.msra.mxu0 (%p183_p1), %v1052_v46 }
 0x48f   :  { %976 = vmatprep.subr.bf16.mxu0 (%p183_p1), %v1053_v47 }
 0x490   : > { %533 = vadd.xlane.f32.xlu1 %v532_v58 }
 0x492   :  { %977 = vmatpush3.bf16.msra.mxu0 (%p183_p1), %v1053_v47 }
 0x494   : > { %261 = vadd.xlane.f32.xlu1 %v260_v59 }
 0x498   : > { %264 = vadd.xlane.f32.xlu1 %v263_v60 }
 0x4e8   : > { %v656_v21 = vpop.xlane.xlu0 %655 }
 0x4ec   : > { %v384_v63 = vpop.xlane.xlu0 %383 }
 0x4ed   : > { %1036 = vrcp.f32 %v384_v63 }
 0x4fa   : > { %v1037_v4 = vpop.eup %1036 }
 0x509   : > { %v531_v9 = vpop.xlane.xlu0 %530 }
 0x510   : > { %v431_v61 = vpop.f32.mrf.mxu0 }
 0x511   : > { %v653_v62 = vpop.xlane.xlu1 %652  ;;  %v438_v6 = vmul.f32 %v1037_v4, %v431_v61 }
 0x512   : > { %v948_v0 = vpop.f32.mrf.mxu0 }
 0x514   : > { %v434_v1 = vpop.f32.mrf.mxu0 }
 0x515   : > { %v387_v2 = vpop.xlane.xlu1 %386 }
 0x516   : > { %1038 = vrcp.f32 %v387_v2  ;;  %v949_v3 = vpop.f32.mrf.mxu0 }
 0x517   : > { %1040 = vrcp.f32 %v531_v9 }
 0x519   : > { %v534_v43 = vpop.xlane.xlu1 %533 }
 0x51a   : > { %1042 = vrcp.f32 %v534_v43 }
 0x51b   : > { %1044 = vrcp.f32 %v656_v21 }
 0x51c   : > { %1046 = vrcp.f32 %v653_v62 }
 0x51d   : > { %v262_v29 = vpop.xlane.xlu1 %261 }
 0x521   : > { %v265_v30 = vpop.xlane.xlu1 %264 }
 0x522   : > { %1048 = vrcp.f32 %v265_v30 }
 0x523   : > { %v1039_v5 = vpop.eup %1038  ;;  %1050 = vrcp.f32 %v262_v29 }
 0x524   : > { %v439_v8 = vmul.f32 %v1039_v5, %v434_v1  ;;  %v1041_v12 = vpop.eup %1040 }
 0x526   : > { %v440_v42 = vpack.c.bf16 %v439_v8, %v438_v6 }
 0x527   : > { %v1043_v13 = vpop.eup %1042 }
 0x528   : > { %442 = vrot.lane.b32.xlu1 %v440_v42, %s1169_s22  ;;  %v1045_v22 = vpop.eup %1044 }
 0x529   : > { %v1047_v23 = vpop.eup %1046 }
 0x52f   : > { %v1049_v31 = vpop.eup %1048 }
 0x530   : > { %v1051_v32 = vpop.eup %1050  ;;  %v317_v33 = vmul.f32 %v1049_v31, %v1280_v55 }
 0x531   : > { %v316_v34 = vmul.f32 %v1051_v32, %v1278_v53 }
 0x533   : > { %v318_v35 = vpack.c.bf16 %v317_v33, %v316_v34 }
 0x545   : > { %v578_v10 = vpop.f32.mrf.mxu0 }
 0x546   : > { %v585_v15 = vmul.f32 %v1041_v12, %v578_v10 }
 0x547   : > { %v960_v11 = vpop.f32.mrf.mxu0 }
 0x549   : > { %v581_v14 = vpop.f32.mrf.mxu0 }
 0x54a   : > { %v586_v16 = vmul.f32 %v1043_v13, %v581_v14 }
 0x54b   : > { %v961_v17 = vpop.f32.mrf.mxu0 }
 0x54c   : > { %v587_v18 = vpack.c.bf16 %v586_v16, %v585_v15 }
 0x54d   : > { %v700_v19 = vpop.f32.mrf.mxu0 }
 0x54e   : > { %v707_v25 = vmul.f32 %v1047_v23, %v700_v19 }
 0x54f   : > { %v972_v20 = vpop.f32.mrf.mxu0 }
 0x551   : > { %v703_v24 = vpop.f32.mrf.mxu0 }
 0x552   : > { %v708_v26 = vmul.f32 %v1045_v22, %v703_v24 }
 0x553   : > { %v973_v27 = vpop.f32.mrf.mxu0 }
 0x554   : > { %v709_v28 = vpack.c.bf16 %v708_v26, %v707_v25 }
 0x556   : > { %711 = vrot.lane.b32.xlu0 %v709_v28, %s1169_s22 }
 0x59a   : > { %v443_v36 = vpop.permute.xlu1 %442 }
 0x59b   : > { %v446_v37 = vsel %vm199_vm4, %v318_v35, %v443_v36 }
 0x59c   : > { %v871_v38 = vcombine.low %v446_v37, %v446_v37  ;;  %v872_v39 = vcombine.high %v446_v37, %v446_v37 }
 0x59e   : > { %457 = vst.msk [vmem:[%s455_s23] sm:$0xf] %vm456_vm6, %v871_v38  ;;  %458 = vst.msk [vmem:[%s455_s23 + $0x4] sm:$0xf] %vm456_vm6, %v872_v39 }
 0x5c8   : > { %v712_v40 = vpop.permute.xlu0 %711 }
 0x5c9   : > { %v715_v41 = vsel %vm199_vm4, %v587_v18, %v712_v40 }
 0x5ca   : > { %v879_v44 = vcombine.low %v715_v41, %v715_v41  ;;  %v880_v55 = vcombine.high %v715_v41, %v715_v41 }
 0x5cc   : > { %721 = vrot.lane.b32.xlu0 %v879_v44, %s1170_s24 }
 0x5d0   : > { %723 = vrot.lane.b32.xlu0 %v880_v55, %s1170_s24 }
 0x63e   : > { %v722_v53 = vpop.permute.xlu0 %721 }
 0x63f   : > { %728 = vst.msk [vmem:[%s455_s23] sm:$0xf] %vm727_vm7, %v722_v53  ;;  %185 = sbr.rel (!%p183_p1) target bundleno = 250 (0xfa), region = 61 }
 0x642   : > { %v724_v45 = vpop.permute.xlu0 %723 }
 0x643   : > { %729 = vst.msk [vmem:[%s455_s23 + $0x4] sm:$0xf] %vm727_vm7, %v724_v45 }
 0x64a   :  { %v1054_v48 = vld [vmem:[#allocation3] sm:$0xff]   ;;  %v1055_v49 = vld [vmem:[#allocation3 + $0x8] sm:$0xff]  }
 0x64b   :  { %978 = vmatprep.mubr.msk.bf16.mxu0 %vm100_vm0, %v1054_v48 }
 0x64c   :  { %979 = vmatmul.mubr.msk.bf16.vlgmr.msra.gmra.mxu0 %vm100_vm0, %v1055_v49 }
 0x70c   :  { %v980_v51 = vpop.f32.mrf.mxu0 }
 0x70d   :  { %v816_v52 = vadd.f32 %v980_v51, %v881_v50 }
 0x70e   :  { %v807_v54 = vpop.f32.mrf.mxu0 }
 0x70f   :  { %824 = vst.msk [vmem:[#allocation10 + $0x10] sm:$0xff] %vm100_vm0, %v816_v52  ;;  %v808_v7 = vadd.f32 %v881_v50, %v807_v54 }
 0x710   :  { %v981_v56 = vpop.f32.mrf.mxu0 }
 0x711   :  { %822 = vst.msk [vmem:[#allocation10] sm:$0xff] %vm100_vm0, %v808_v7  ;;  %v819_v57 = vadd.f32 %v981_v56, %v881_v50 }
 0x712   :  { %v810_v58 = vpop.f32.mrf.mxu0 }
 0x713   :  { %825 = vst.msk [vmem:[#allocation10 + $0x18] sm:$0xff] %vm100_vm0, %v819_v57  ;;  %v811_v59 = vadd.f32 %v881_v50, %v810_v58 }
 0x715   :  { %823 = vst.msk [vmem:[#allocation10 + $0x8] sm:$0xff] %vm100_vm0, %v811_v59 }
 0x716   :  { %1127 = shalt.err (!%p1124_p6)
}
 0x717   :  { %s1172_s29 = smov 128   ;;  %s1173_s30 = smov 8  }
 0x718   :  { %837 = dma.vmem_to_hbm [thread:$0]  %s832_s28, 512, %s1342_s5, [#allocation6], %s1172_s29, %s1172_s29, %s1173_s30  }
 0x719   :  { %1144 = dma.done.wait [#allocation6], 512  }
 0x71a   :  { %1145 = vsyncadd [#allocation6], 4294966784 }
 0x71b   :  { %841 = vsyncpa [#allocation5], 1 }
 0x71c   :  { %842 = vsyncpa [#allocation8], 1 }
 0x71d   :  { %843 = vsyncpa [#allocation6], 1 }

</bundles_post_ra>
